<compile_context>
chip_gen: v5e
topology: v5e:2x2
jax: 0.10.0
libtpu: 0.0.40
codegen_flags: <defaults>
</compile_context>

<pallas_src>
import functools

import numpy as np

import jax
import jax.numpy as jnp
from jax.experimental import pallas as pl
from jax.experimental.pallas import tpu as pltpu

EPS = 1e-3  # nn.BatchNorm2d(eps=0.001)


# ----------------------------- helpers ------------------------------------------------
def _round_up(v, m):
    return -(-v // m) * m


def _vmem_limit_bytes():
    # Generation-aware scoped-VMEM limit (v5e/v6e: 128 MiB, v7x: 64 MiB physical).
    try:
        cap = int(pltpu.get_tpu_info().vmem_capacity_bytes)
        return int(min(cap * 3 // 4, 100 * 1024 * 1024))
    except Exception:
        return None  # fall back to the compiler default


# ----------------------------- Pallas kernels ------------------------------------------
def _grouped_conv_kernel(x_ref, w_ref, mask_ref, y_ref, stats_ref, *, taps, lout_pad):
    """Grouped / dense conv as per-group, per-tap MXU matmuls + single-pass BN stats.

    x_ref:    (n_ph, G, Cin_g, Lin_pad)  bf16   (one image, phase-split, flat spatial)
    w_ref:    (k*k, G, Coutg, Cin_g)     bf16
    mask_ref: (1, Lout_pad)              f32    (1.0 on valid output positions)
    y_ref:    (G, Coutg, Lout_pad)       bf16
    stats_ref:(G, Coutg, 2)              f32    (per-channel sum, sum of squares)
    """
    G = y_ref.shape[0]
    coutg = y_ref.shape[1]
    mask = mask_ref[...]
    for g in range(G):
        acc = jnp.zeros((coutg, lout_pad), jnp.float32)
        for t, (ph, sh) in enumerate(taps):
            xs = x_ref[ph, g, :, sh:sh + lout_pad]                  # (Cin_g, Lout_pad) bf16
            acc = acc + jnp.dot(w_ref[t, g], xs,
                                preferred_element_type=jnp.float32)
        y_ref[g] = acc.astype(y_ref.dtype)                          # bf16 write, lane-dense
        ym = acc * mask                                             # f32 stats (pre-cast)
        stats_ref[g, :, 0:1] = jnp.sum(ym, axis=1, keepdims=True)
        stats_ref[g, :, 1:2] = jnp.sum(ym * ym, axis=1, keepdims=True)


def _depthwise_conv_kernel(x_ref, w_ref, mask_ref, y_ref, stats_ref, *, taps, lout_pad):
    """Depthwise conv as a VPU tap loop (no MXU, no im2col) + single-pass BN stats.

    x_ref:    (n_ph, Cin, Lin_pad)  bf16
    w_ref:    (Cout=Cin, k*k)       f32
    mask_ref: (1, Lout_pad)         f32
    y_ref:    (Cout, Lout_pad)      bf16
    stats_ref:(Cout, 2)             f32
    """
    cout = y_ref.shape[0]
    acc = jnp.zeros((cout, lout_pad), jnp.float32)
    for t, (ph, sh) in enumerate(taps):
        xs = x_ref[ph, :, sh:sh + lout_pad].astype(jnp.float32)     # (Cin, Lout_pad)
        acc = acc + xs * w_ref[:, t:t + 1]                          # per-channel FMA (VPU)
    y_ref[...] = acc.astype(y_ref.dtype)
    ym = acc * mask_ref[...]
    stats_ref[:, 0:1] = jnp.sum(ym, axis=1, keepdims=True)
    stats_ref[:, 1:2] = jnp.sum(ym * ym, axis=1, keepdims=True)


def _bn_swish_kernel(y_ref, scale_ref, shift_ref, o_ref):
    # y_ref: (Cout, bt) bf16; scale/shift: (Cout, 1) f32; o_ref: (Cout, bt) f32
    z = y_ref[...].astype(jnp.float32) * scale_ref[...] + shift_ref[...]
    o_ref[...] = z * jax.nn.sigmoid(z)


# ----------------------------- wrapper --------------------------------------------------
def conv_block_forward(x, weight, gamma, beta, *, stride=1, groups=1, dilate=1):
    """x: (N, Cin, H, W) f32; weight: (Cout, Cin//groups, k, k); gamma/beta: (Cout,)."""
    assert stride in (1, 2)
    if stride > 1:
        dilate = 1
    N, Cin, H, W = x.shape
    Cout, Cin_g, Kh, Kw = weight.shape
    assert Kh == Kw
    k = Kh
    G = groups
    assert Cin == G * Cin_g and Cout % G == 0
    Coutg = Cout // G
    pad = (k - 1) // 2 * dilate
    H_pad, W_pad = H + 2 * pad, W + 2 * pad
    Ho = (H_pad - dilate * (k - 1) - 1) // stride + 1
    Wo = (W_pad - dilate * (k - 1) - 1) // stride + 1
    s = stride
    n_ph = s * s
    H_ph = -(-H_pad // s)
    W_ph = -(-W_pad // s)

    # Taps: (phase index, static flat shift within phase) per (kh, kw).
    taps = []
    for kh in range(k):
        for kw in range(k):
            a, b = kh * dilate, kw * dilate
            taps.append(((a % s) * s + (b % s), (a // s) * W_ph + (b // s)))
    max_shift = max(sh for _, sh in taps)

    Lout = Ho * W_ph                       # flat (valid-rows, all-phase-cols) grid
    Lout_pad = _round_up(Lout, 128)        # lane-dense output slab
    Lin_pad = _round_up(Lout_pad + max_shift, 128)

    # --- glue (1x traffic): pad + phase split (space-to-depth for stride 2), flatten ---
    x_pad = jnp.pad(x, ((0, 0), (0, 0), (pad, pad), (pad, pad)))
    phases = []
    for pr in range(s):
        for pc in range(s):
            p = x_pad[:, :, pr::s, pc::s]
            p = jnp.pad(p, ((0, 0), (0, 0),
                            (0, H_ph - p.shape[2]), (0, W_ph - p.shape[3])))
            phases.append(p)
    xph = jnp.stack(phases, axis=1).reshape(N, n_ph, Cin, H_ph * W_ph)
    if Lin_pad >= H_ph * W_ph:
        xph = jnp.pad(xph, ((0, 0), (0, 0), (0, 0), (0, Lin_pad - H_ph * W_ph)))
    else:
        xph = xph[..., :Lin_pad]
    xph = xph.astype(jnp.bfloat16)

    # Valid-output mask over the flat grid (BN stats must ignore overhang columns / tail).
    q = np.arange(Lout_pad)
    mask = jnp.asarray(((q < Lout) & ((q % W_ph) < Wo))
                       .astype(np.float32).reshape(1, Lout_pad))

    vmem = _vmem_limit_bytes()
    cparams_a = pltpu.CompilerParams(dimension_semantics=("parallel",),
                                     vmem_limit_bytes=vmem)

    depthwise = (G == Cin) and (Cin_g == 1) and (Cout == Cin)
    if depthwise:
        # --- Stage A (depthwise): VPU tap loop -----------------------------------------
        w_dw = weight.astype(jnp.float32).reshape(Cout, k * k)
        y, stats = pl.pallas_call(
            functools.partial(_depthwise_conv_kernel, taps=taps, lout_pad=Lout_pad),
            out_shape=(jax.ShapeDtypeStruct((N, Cout, Lout_pad), jnp.bfloat16),
                       jax.ShapeDtypeStruct((N, Cout, 2), jnp.float32)),
            grid_spec=pltpu.PrefetchScalarGridSpec(
                num_scalar_prefetch=0,
                grid=(N,),
                in_specs=[
                    pl.BlockSpec((None, n_ph, Cin, Lin_pad), lambda n: (n, 0, 0, 0)),
                    pl.BlockSpec((Cout, k * k), lambda n: (0, 0)),
                    pl.BlockSpec((1, Lout_pad), lambda n: (0, 0)),
                ],
                out_specs=[
                    pl.BlockSpec((None, Cout, Lout_pad), lambda n: (n, 0, 0)),
                    pl.BlockSpec((None, Cout, 2), lambda n: (n, 0, 0)),
                ]),
            compiler_params=cparams_a,
        )(xph, w_dw, mask)
    else:
        # --- Stage A (grouped / dense): per-group MXU matmuls --------------------------
        xg = xph.reshape(N, n_ph, G, Cin_g, Lin_pad)
        w_t = weight.astype(jnp.bfloat16).reshape(G, Coutg, Cin_g, k, k)
        w_t = w_t.transpose(3, 4, 0, 1, 2).reshape(k * k, G, Coutg, Cin_g)
        y, stats = pl.pallas_call(
            functools.partial(_grouped_conv_kernel, taps=taps, lout_pad=Lout_pad),
            out_shape=(jax.ShapeDtypeStruct((N, G, Coutg, Lout_pad), jnp.bfloat16),
                       jax.ShapeDtypeStruct((N, G, Coutg, 2), jnp.float32)),
            grid_spec=pltpu.PrefetchScalarGridSpec(
                num_scalar_prefetch=0,
                grid=(N,),
                in_specs=[
                    pl.BlockSpec((None, n_ph, G, Cin_g, Lin_pad),
                                 lambda n: (n, 0, 0, 0, 0)),
                    pl.BlockSpec((k * k, G, Coutg, Cin_g), lambda n: (0, 0, 0, 0)),
                    pl.BlockSpec((1, Lout_pad), lambda n: (0, 0)),
                ],
                out_specs=[
                    pl.BlockSpec((None, G, Coutg, Lout_pad), lambda n: (n, 0, 0, 0)),
                    pl.BlockSpec((None, G, Coutg, 2), lambda n: (n, 0, 0, 0)),
                ]),
            compiler_params=cparams_a,
        )(xg, w_t, mask)
        y = y.reshape(N, Cout, Lout_pad)
        stats = stats.reshape(N, Cout, 2)

    # --- tiny glue: fold train-mode BN batch statistics into per-channel scale/shift ----
    count = N * Ho * Wo
    sums = jnp.sum(stats, axis=0)                      # (Cout, 2)
    mean = sums[:, 0] / count
    var = jnp.maximum(sums[:, 1] / count - mean * mean, 0.0)
    inv = jax.lax.rsqrt(var + EPS)
    gamma_f = gamma.astype(jnp.float32)
    beta_f = beta.astype(jnp.float32)
    scale = (gamma_f * inv).reshape(Cout, 1)
    shift = (beta_f - mean * gamma_f * inv).reshape(Cout, 1)

    # --- Stage B: normalize + Swish over the (Cout, Lout_pad) slab (lane-dense) --------
    bt = 128
    for cand in (2048, 1024, 512, 256, 128):
        if Lout_pad % cand == 0:
            bt = cand
            break
    nb = Lout_pad // bt
    out = pl.pallas_call(
        _bn_swish_kernel,
        out_shape=jax.ShapeDtypeStruct((N, Cout, Lout_pad), jnp.float32),
        grid_spec=pltpu.PrefetchScalarGridSpec(
            num_scalar_prefetch=0,
            grid=(N, nb),
            in_specs=[
                pl.BlockSpec((None, Cout, bt), lambda n, i: (n, 0, i)),
                pl.BlockSpec((Cout, 1), lambda n, i: (0, 0)),
                pl.BlockSpec((Cout, 1), lambda n, i: (0, 0)),
            ],
            out_specs=pl.BlockSpec((None, Cout, bt), lambda n, i: (n, 0, i))),
        compiler_params=pltpu.CompilerParams(
            dimension_semantics=("parallel", "parallel"), vmem_limit_bytes=vmem),
    )(y, scale, shift)

    # Channel-first flat slab -> NCHW: drop overhang columns / padded tail (no transpose).
    out = out[:, :, :Lout].reshape(N, Cout, Ho, W_ph)[:, :, :, :Wo]
    return out


# ----------------------------- pure-JAX reference ----------------------------------------
def reference(x, weight, gamma, beta, *, stride=1, groups=1, dilate=1, round_y_bf16=False):
    """Pure-JAX reference of ConvBlock.forward (train-mode BN) for validation."""
    if stride > 1:
        dilate = 1
    k = weight.shape[-1]
    pad = (k - 1) // 2 * dilate
    y = jax.lax.conv_general_dilated(
        x, weight, window_strides=(stride, stride),
        padding=((pad, pad), (pad, pad)), rhs_dilation=(dilate, dilate),
        feature_group_count=groups,
        dimension_numbers=("NCHW", "OIHW", "NCHW"),
        precision=jax.lax.Precision.HIGHEST,
    )
    mean = jnp.mean(y, axis=(0, 2, 3), keepdims=True)
    var = jnp.mean(jnp.square(y - mean), axis=(0, 2, 3), keepdims=True)
    if round_y_bf16:  # mirror the kernel's bf16 intermediate y (stats taken pre-cast)
        y = y.astype(jnp.bfloat16).astype(jnp.float32)
    z = (y - mean) * jax.lax.rsqrt(var + EPS) * gamma.reshape(1, -1, 1, 1) \
        + beta.reshape(1, -1, 1, 1)
    return z * jax.nn.sigmoid(z)


def _check(x, w, g, b, *, stride, groups, dilate, tag=""):
    fwd = jax.jit(functools.partial(conv_block_forward, stride=stride, groups=groups,
                                    dilate=dilate))
    out = jax.block_until_ready(fwd(x, w, g, b))

    # Check vs a reference using the same bf16-truncated operands + bf16-rounded y.
    xb = x.astype(jnp.bfloat16).astype(jnp.float32)
    wb = w.astype(jnp.bfloat16).astype(jnp.float32)
    ref_b = reference(xb, wb, g, b, stride=stride, groups=groups, dilate=dilate,
                      round_y_bf16=True)
    assert out.shape == ref_b.shape, (tag, out.shape, ref_b.shape)
    assert jnp.allclose(out, ref_b, rtol=2e-2, atol=2e-2), f"mismatch (bf16 ref) {tag}"

    # Loose sanity check against the full-f32 reference.
    ref_f = reference(x, w, g, b, stride=stride, groups=groups, dilate=dilate)
    assert jnp.allclose(out, ref_f, rtol=1e-1, atol=1e-1), f"mismatch (f32 ref) {tag}"


if __name__ == "__main__":
    key = jax.random.PRNGKey(0)
    kx, kw, kg, kb, kw2, kg2, kb2 = jax.random.split(key, 7)

    N, Cin, H, W = 2, 4, 16, 16
    x = jax.random.normal(kx, (N, Cin, H, W), jnp.float32)

    # Config A: ConvBlock(in=4, out=8, k=3, stride=1, groups=2, dilate=1)  -> MXU path
    Cout, ksz, groups = 8, 3, 2
    weight = 0.1 * jax.random.normal(kw, (Cout, Cin // groups, ksz, ksz), jnp.float32)
    gamma = 1.0 + 0.1 * jax.random.normal(kg, (Cout,), jnp.float32)
    beta = 0.1 * jax.random.normal(kb, (Cout,), jnp.float32)
    _check(x, weight, gamma, beta, stride=1, groups=groups, dilate=1, tag="grouped s1")

    # Config B: depthwise ConvBlock(in=4, out=4, k=3, stride=2, groups=4) -> VPU path
    Cout2, groups2 = 4, 4
    weight2 = 0.1 * jax.random.normal(kw2, (Cout2, 1, ksz, ksz), jnp.float32)
    gamma2 = 1.0 + 0.1 * jax.random.normal(kg2, (Cout2,), jnp.float32)
    beta2 = 0.1 * jax.random.normal(kb2, (Cout2,), jnp.float32)
    _check(x, weight2, gamma2, beta2, stride=2, groups=groups2, dilate=1,
           tag="depthwise s2")

    print("KERNEL_OK")
</pallas_src>

<mosaic_0001>
module attributes {stable_mosaic.version = 11 : i64} {
  func.func @_grouped_conv_kernel(%arg0: i32, %arg1: memref<1x1x2x2x512xbf16, #tpu.memory_space<vmem>>, %arg2: memref<9x2x4x2xbf16, #tpu.memory_space<vmem>>, %arg3: memref<1x384xf32, #tpu.memory_space<vmem>>, %arg4: memref<1x2x4x384xbf16, #tpu.memory_space<vmem>>, %arg5: memref<1x2x4x2xf32, #tpu.memory_space<vmem>>) attributes {dimension_semantics = [#tpu.dimension_semantics<parallel>], iteration_bounds = array<i64: 2>, scalar_prefetch = 0 : i64, scratch_operands = 0 : i64, tpu.core_type = #tpu.core_type<tc>, window_params = [{transform_indices = @transform_0, window_bounds = array<i64: 1, 1, 2, 2, 512>}, {pipeline_mode = #tpu.pipeline_mode<synchronous>, transform_indices = @transform_1, window_bounds = array<i64: 9, 2, 4, 2>}, {pipeline_mode = #tpu.pipeline_mode<synchronous>, transform_indices = @transform_2, window_bounds = array<i64: 1, 384>}, {transform_indices = @transform_3, window_bounds = array<i64: 1, 2, 4, 384>}, {transform_indices = @transform_4, window_bounds = array<i64: 1, 2, 4, 2>}]} {
    %c0 = arith.constant 0 : index
    %c0_0 = arith.constant 0 : index
    %0 = vector.load %arg3[%c0, %c0_0] : memref<1x384xf32, #tpu.memory_space<vmem>>, vector<1x384xf32>
    %cst = arith.constant 0.000000e+00 : f32
    %1 = vector.broadcast %cst : f32 to vector<4x384xf32>
    %c0_1 = arith.constant 0 : index
    %c0_2 = arith.constant 0 : index
    %c0_3 = arith.constant 0 : index
    %c0_4 = arith.constant 0 : index
    %c0_5 = arith.constant 0 : index
    %2 = vector.load %arg1[%c0_1, %c0_2, %c0_3, %c0_4, %c0_5] : memref<1x1x2x2x512xbf16, #tpu.memory_space<vmem>>, vector<1x1x1x2x384xbf16>
    %3 = vector.shape_cast %2 : vector<1x1x1x2x384xbf16> to vector<2x384xbf16>
    %c0_6 = arith.constant 0 : index
    %c0_7 = arith.constant 0 : index
    %c0_8 = arith.constant 0 : index
    %c0_9 = arith.constant 0 : index
    %4 = vector.load %arg2[%c0_6, %c0_7, %c0_8, %c0_9] : memref<9x2x4x2xbf16, #tpu.memory_space<vmem>>, vector<1x1x4x2xbf16>
    %5 = vector.shape_cast %4 : vector<1x1x4x2xbf16> to vector<4x2xbf16>
    %cst_10 = arith.constant dense<0.000000e+00> : vector<4x384xf32>
    %6 = tpu.matmul %5, %3, %cst_10 {dimension_numbers = #tpu.dot_dimension_numbers<[1], [0], [0], [1], [0, 0, 1, 1], [], []>} : vector<4x2xbf16>, vector<2x384xbf16>, vector<4x384xf32> -> vector<4x384xf32>
    %7 = arith.addf %1, %6 : vector<4x384xf32>
    %c0_11 = arith.constant 0 : index
    %c0_12 = arith.constant 0 : index
    %c0_13 = arith.constant 0 : index
    %c0_14 = arith.constant 0 : index
    %c1 = arith.constant 1 : index
    %8 = vector.load %arg1[%c0_11, %c0_12, %c0_13, %c0_14, %c1] : memref<1x1x2x2x512xbf16, #tpu.memory_space<vmem>>, vector<1x1x1x2x384xbf16>
    %9 = vector.shape_cast %8 : vector<1x1x1x2x384xbf16> to vector<2x384xbf16>
    %c1_15 = arith.constant 1 : index
    %c0_16 = arith.constant 0 : index
    %c0_17 = arith.constant 0 : index
    %c0_18 = arith.constant 0 : index
    %10 = vector.load %arg2[%c1_15, %c0_16, %c0_17, %c0_18] : memref<9x2x4x2xbf16, #tpu.memory_space<vmem>>, vector<1x1x4x2xbf16>
    %11 = vector.shape_cast %10 : vector<1x1x4x2xbf16> to vector<4x2xbf16>
    %cst_19 = arith.constant dense<0.000000e+00> : vector<4x384xf32>
    %12 = tpu.matmul %11, %9, %cst_19 {dimension_numbers = #tpu.dot_dimension_numbers<[1], [0], [0], [1], [0, 0, 1, 1], [], []>} : vector<4x2xbf16>, vector<2x384xbf16>, vector<4x384xf32> -> vector<4x384xf32>
    %13 = arith.addf %7, %12 : vector<4x384xf32>
    %c0_20 = arith.constant 0 : index
    %c0_21 = arith.constant 0 : index
    %c0_22 = arith.constant 0 : index
    %c0_23 = arith.constant 0 : index
    %c2 = arith.constant 2 : index
    %14 = vector.load %arg1[%c0_20, %c0_21, %c0_22, %c0_23, %c2] : memref<1x1x2x2x512xbf16, #tpu.memory_space<vmem>>, vector<1x1x1x2x384xbf16>
    %15 = vector.shape_cast %14 : vector<1x1x1x2x384xbf16> to vector<2x384xbf16>
    %c2_24 = arith.constant 2 : index
    %c0_25 = arith.constant 0 : index
    %c0_26 = arith.constant 0 : index
    %c0_27 = arith.constant 0 : index
    %16 = vector.load %arg2[%c2_24, %c0_25, %c0_26, %c0_27] : memref<9x2x4x2xbf16, #tpu.memory_space<vmem>>, vector<1x1x4x2xbf16>
    %17 = vector.shape_cast %16 : vector<1x1x4x2xbf16> to vector<4x2xbf16>
    %cst_28 = arith.constant dense<0.000000e+00> : vector<4x384xf32>
    %18 = tpu.matmul %17, %15, %cst_28 {dimension_numbers = #tpu.dot_dimension_numbers<[1], [0], [0], [1], [0, 0, 1, 1], [], []>} : vector<4x2xbf16>, vector<2x384xbf16>, vector<4x384xf32> -> vector<4x384xf32>
    %19 = arith.addf %13, %18 : vector<4x384xf32>
    %c0_29 = arith.constant 0 : index
    %c0_30 = arith.constant 0 : index
    %c0_31 = arith.constant 0 : index
    %c0_32 = arith.constant 0 : index
    %c18 = arith.constant 18 : index
    %20 = vector.load %arg1[%c0_29, %c0_30, %c0_31, %c0_32, %c18] : memref<1x1x2x2x512xbf16, #tpu.memory_space<vmem>>, vector<1x1x1x2x384xbf16>
    %21 = vector.shape_cast %20 : vector<1x1x1x2x384xbf16> to vector<2x384xbf16>
    %c3 = arith.constant 3 : index
    %c0_33 = arith.constant 0 : index
    %c0_34 = arith.constant 0 : index
    %c0_35 = arith.constant 0 : index
    %22 = vector.load %arg2[%c3, %c0_33, %c0_34, %c0_35] : memref<9x2x4x2xbf16, #tpu.memory_space<vmem>>, vector<1x1x4x2xbf16>
    %23 = vector.shape_cast %22 : vector<1x1x4x2xbf16> to vector<4x2xbf16>
    %cst_36 = arith.constant dense<0.000000e+00> : vector<4x384xf32>
    %24 = tpu.matmul %23, %21, %cst_36 {dimension_numbers = #tpu.dot_dimension_numbers<[1], [0], [0], [1], [0, 0, 1, 1], [], []>} : vector<4x2xbf16>, vector<2x384xbf16>, vector<4x384xf32> -> vector<4x384xf32>
    %25 = arith.addf %19, %24 : vector<4x384xf32>
    %c0_37 = arith.constant 0 : index
    %c0_38 = arith.constant 0 : index
    %c0_39 = arith.constant 0 : index
    %c0_40 = arith.constant 0 : index
    %c19 = arith.constant 19 : index
    %26 = vector.load %arg1[%c0_37, %c0_38, %c0_39, %c0_40, %c19] : memref<1x1x2x2x512xbf16, #tpu.memory_space<vmem>>, vector<1x1x1x2x384xbf16>
    %27 = vector.shape_cast %26 : vector<1x1x1x2x384xbf16> to vector<2x384xbf16>
    %c4 = arith.constant 4 : index
    %c0_41 = arith.constant 0 : index
    %c0_42 = arith.constant 0 : index
    %c0_43 = arith.constant 0 : index
    %28 = vector.load %arg2[%c4, %c0_41, %c0_42, %c0_43] : memref<9x2x4x2xbf16, #tpu.memory_space<vmem>>, vector<1x1x4x2xbf16>
    %29 = vector.shape_cast %28 : vector<1x1x4x2xbf16> to vector<4x2xbf16>
    %cst_44 = arith.constant dense<0.000000e+00> : vector<4x384xf32>
    %30 = tpu.matmul %29, %27, %cst_44 {dimension_numbers = #tpu.dot_dimension_numbers<[1], [0], [0], [1], [0, 0, 1, 1], [], []>} : vector<4x2xbf16>, vector<2x384xbf16>, vector<4x384xf32> -> vector<4x384xf32>
    %31 = arith.addf %25, %30 : vector<4x384xf32>
    %c0_45 = arith.constant 0 : index
    %c0_46 = arith.constant 0 : index
    %c0_47 = arith.constant 0 : index
    %c0_48 = arith.constant 0 : index
    %c20 = arith.constant 20 : index
    %32 = vector.load %arg1[%c0_45, %c0_46, %c0_47, %c0_48, %c20] : memref<1x1x2x2x512xbf16, #tpu.memory_space<vmem>>, vector<1x1x1x2x384xbf16>
    %33 = vector.shape_cast %32 : vector<1x1x1x2x384xbf16> to vector<2x384xbf16>
    %c5 = arith.constant 5 : index
    %c0_49 = arith.constant 0 : index
    %c0_50 = arith.constant 0 : index
    %c0_51 = arith.constant 0 : index
    %34 = vector.load %arg2[%c5, %c0_49, %c0_50, %c0_51] : memref<9x2x4x2xbf16, #tpu.memory_space<vmem>>, vector<1x1x4x2xbf16>
    %35 = vector.shape_cast %34 : vector<1x1x4x2xbf16> to vector<4x2xbf16>
    %cst_52 = arith.constant dense<0.000000e+00> : vector<4x384xf32>
    %36 = tpu.matmul %35, %33, %cst_52 {dimension_numbers = #tpu.dot_dimension_numbers<[1], [0], [0], [1], [0, 0, 1, 1], [], []>} : vector<4x2xbf16>, vector<2x384xbf16>, vector<4x384xf32> -> vector<4x384xf32>
    %37 = arith.addf %31, %36 : vector<4x384xf32>
    %c0_53 = arith.constant 0 : index
    %c0_54 = arith.constant 0 : index
    %c0_55 = arith.constant 0 : index
    %c0_56 = arith.constant 0 : index
    %c36 = arith.constant 36 : index
    %38 = vector.load %arg1[%c0_53, %c0_54, %c0_55, %c0_56, %c36] : memref<1x1x2x2x512xbf16, #tpu.memory_space<vmem>>, vector<1x1x1x2x384xbf16>
    %39 = vector.shape_cast %38 : vector<1x1x1x2x384xbf16> to vector<2x384xbf16>
    %c6 = arith.constant 6 : index
    %c0_57 = arith.constant 0 : index
    %c0_58 = arith.constant 0 : index
    %c0_59 = arith.constant 0 : index
    %40 = vector.load %arg2[%c6, %c0_57, %c0_58, %c0_59] : memref<9x2x4x2xbf16, #tpu.memory_space<vmem>>, vector<1x1x4x2xbf16>
    %41 = vector.shape_cast %40 : vector<1x1x4x2xbf16> to vector<4x2xbf16>
    %cst_60 = arith.constant dense<0.000000e+00> : vector<4x384xf32>
    %42 = tpu.matmul %41, %39, %cst_60 {dimension_numbers = #tpu.dot_dimension_numbers<[1], [0], [0], [1], [0, 0, 1, 1], [], []>} : vector<4x2xbf16>, vector<2x384xbf16>, vector<4x384xf32> -> vector<4x384xf32>
    %43 = arith.addf %37, %42 : vector<4x384xf32>
    %c0_61 = arith.constant 0 : index
    %c0_62 = arith.constant 0 : index
    %c0_63 = arith.constant 0 : index
    %c0_64 = arith.constant 0 : index
    %c37 = arith.constant 37 : index
    %44 = vector.load %arg1[%c0_61, %c0_62, %c0_63, %c0_64, %c37] : memref<1x1x2x2x512xbf16, #tpu.memory_space<vmem>>, vector<1x1x1x2x384xbf16>
    %45 = vector.shape_cast %44 : vector<1x1x1x2x384xbf16> to vector<2x384xbf16>
    %c7 = arith.constant 7 : index
    %c0_65 = arith.constant 0 : index
    %c0_66 = arith.constant 0 : index
    %c0_67 = arith.constant 0 : index
    %46 = vector.load %arg2[%c7, %c0_65, %c0_66, %c0_67] : memref<9x2x4x2xbf16, #tpu.memory_space<vmem>>, vector<1x1x4x2xbf16>
    %47 = vector.shape_cast %46 : vector<1x1x4x2xbf16> to vector<4x2xbf16>
    %cst_68 = arith.constant dense<0.000000e+00> : vector<4x384xf32>
    %48 = tpu.matmul %47, %45, %cst_68 {dimension_numbers = #tpu.dot_dimension_numbers<[1], [0], [0], [1], [0, 0, 1, 1], [], []>} : vector<4x2xbf16>, vector<2x384xbf16>, vector<4x384xf32> -> vector<4x384xf32>
    %49 = arith.addf %43, %48 : vector<4x384xf32>
    %c0_69 = arith.constant 0 : index
    %c0_70 = arith.constant 0 : index
    %c0_71 = arith.constant 0 : index
    %c0_72 = arith.constant 0 : index
    %c38 = arith.constant 38 : index
    %50 = vector.load %arg1[%c0_69, %c0_70, %c0_71, %c0_72, %c38] : memref<1x1x2x2x512xbf16, #tpu.memory_space<vmem>>, vector<1x1x1x2x384xbf16>
    %51 = vector.shape_cast %50 : vector<1x1x1x2x384xbf16> to vector<2x384xbf16>
    %c8 = arith.constant 8 : index
    %c0_73 = arith.constant 0 : index
    %c0_74 = arith.constant 0 : index
    %c0_75 = arith.constant 0 : index
    %52 = vector.load %arg2[%c8, %c0_73, %c0_74, %c0_75] : memref<9x2x4x2xbf16, #tpu.memory_space<vmem>>, vector<1x1x4x2xbf16>
    %53 = vector.shape_cast %52 : vector<1x1x4x2xbf16> to vector<4x2xbf16>
    %cst_76 = arith.constant dense<0.000000e+00> : vector<4x384xf32>
    %54 = tpu.matmul %53, %51, %cst_76 {dimension_numbers = #tpu.dot_dimension_numbers<[1], [0], [0], [1], [0, 0, 1, 1], [], []>} : vector<4x2xbf16>, vector<2x384xbf16>, vector<4x384xf32> -> vector<4x384xf32>
    %55 = arith.addf %49, %54 : vector<4x384xf32>
    %56 = arith.truncf %55 : vector<4x384xf32> to vector<4x384xbf16>
    %c0_77 = arith.constant 0 : index
    %c0_78 = arith.constant 0 : index
    %c0_79 = arith.constant 0 : index
    %c0_80 = arith.constant 0 : index
    %57 = vector.load %arg4[%c0_77, %c0_78, %c0_79, %c0_80] : memref<1x2x4x384xbf16, #tpu.memory_space<vmem>>, vector<1x1x4x384xbf16>
    %58 = vector.shape_cast %57 : vector<1x1x4x384xbf16> to vector<4x384xbf16>
    %59 = vector.shape_cast %56 : vector<4x384xbf16> to vector<1x1x4x384xbf16>
    tpu.vector_store %arg4[%c0_77, %c0_78, %c0_79, %c0_80], %59 {strides = array<i32>} : memref<1x2x4x384xbf16, #tpu.memory_space<vmem>>, vector<1x1x4x384xbf16>,
    %60 = vector.broadcast %0 : vector<1x384xf32> to vector<4x384xf32>
    %61 = arith.mulf %55, %60 : vector<4x384xf32>
    %cst_81 = arith.constant dense<0.000000e+00> : vector<4xf32>
    %62 = vector.multi_reduction <add>, %61, %cst_81 [1] : vector<4x384xf32> to vector<4xf32>
    %63 = vector.shape_cast %62 : vector<4xf32> to vector<4x1xf32>
    %c0_82 = arith.constant 0 : index
    %c0_83 = arith.constant 0 : index
    %c0_84 = arith.constant 0 : index
    %c0_85 = arith.constant 0 : index
    %64 = vector.load %arg5[%c0_82, %c0_83, %c0_84, %c0_85] : memref<1x2x4x2xf32, #tpu.memory_space<vmem>>, vector<1x1x4x1xf32>
    %65 = vector.shape_cast %64 : vector<1x1x4x1xf32> to vector<4x1xf32>
    %66 = vector.shape_cast %63 : vector<4x1xf32> to vector<1x1x4x1xf32>
    tpu.vector_store %arg5[%c0_82, %c0_83, %c0_84, %c0_85], %66 {strides = array<i32>} : memref<1x2x4x2xf32, #tpu.memory_space<vmem>>, vector<1x1x4x1xf32>,
    %67 = arith.mulf %61, %61 : vector<4x384xf32>
    %cst_86 = arith.constant dense<0.000000e+00> : vector<4xf32>
    %68 = vector.multi_reduction <add>, %67, %cst_86 [1] : vector<4x384xf32> to vector<4xf32>
    %69 = vector.shape_cast %68 : vector<4xf32> to vector<4x1xf32>
    %c0_87 = arith.constant 0 : index
    %c0_88 = arith.constant 0 : index
    %c0_89 = arith.constant 0 : index
    %c1_90 = arith.constant 1 : index
    %70 = vector.load %arg5[%c0_87, %c0_88, %c0_89, %c1_90] : memref<1x2x4x2xf32, #tpu.memory_space<vmem>>, vector<1x1x4x1xf32>
    %71 = vector.shape_cast %70 : vector<1x1x4x1xf32> to vector<4x1xf32>
    %72 = vector.shape_cast %69 : vector<4x1xf32> to vector<1x1x4x1xf32>
    tpu.vector_store %arg5[%c0_87, %c0_88, %c0_89, %c1_90], %72 {strides = array<i32>} : memref<1x2x4x2xf32, #tpu.memory_space<vmem>>, vector<1x1x4x1xf32>,
    %cst_91 = arith.constant 0.000000e+00 : f32
    %73 = vector.broadcast %cst_91 : f32 to vector<4x384xf32>
    %c0_92 = arith.constant 0 : index
    %c0_93 = arith.constant 0 : index
    %c1_94 = arith.constant 1 : index
    %c0_95 = arith.constant 0 : index
    %c0_96 = arith.constant 0 : index
    %74 = vector.load %arg1[%c0_92, %c0_93, %c1_94, %c0_95, %c0_96] : memref<1x1x2x2x512xbf16, #tpu.memory_space<vmem>>, vector<1x1x1x2x384xbf16>
    %75 = vector.shape_cast %74 : vector<1x1x1x2x384xbf16> to vector<2x384xbf16>
    %c0_97 = arith.constant 0 : index
    %c1_98 = arith.constant 1 : index
    %c0_99 = arith.constant 0 : index
    %c0_100 = arith.constant 0 : index
    %76 = vector.load %arg2[%c0_97, %c1_98, %c0_99, %c0_100] : memref<9x2x4x2xbf16, #tpu.memory_space<vmem>>, vector<1x1x4x2xbf16>
    %77 = vector.shape_cast %76 : vector<1x1x4x2xbf16> to vector<4x2xbf16>
    %cst_101 = arith.constant dense<0.000000e+00> : vector<4x384xf32>
    %78 = tpu.matmul %77, %75, %cst_101 {dimension_numbers = #tpu.dot_dimension_numbers<[1], [0], [0], [1], [0, 0, 1, 1], [], []>} : vector<4x2xbf16>, vector<2x384xbf16>, vector<4x384xf32> -> vector<4x384xf32>
    %79 = arith.addf %73, %78 : vector<4x384xf32>
    %c0_102 = arith.constant 0 : index
    %c0_103 = arith.constant 0 : index
    %c1_104 = arith.constant 1 : index
    %c0_105 = arith.constant 0 : index
    %c1_106 = arith.constant 1 : index
    %80 = vector.load %arg1[%c0_102, %c0_103, %c1_104, %c0_105, %c1_106] : memref<1x1x2x2x512xbf16, #tpu.memory_space<vmem>>, vector<1x1x1x2x384xbf16>
    %81 = vector.shape_cast %80 : vector<1x1x1x2x384xbf16> to vector<2x384xbf16>
    %c1_107 = arith.constant 1 : index
    %c1_108 = arith.constant 1 : index
    %c0_109 = arith.constant 0 : index
    %c0_110 = arith.constant 0 : index
    %82 = vector.load %arg2[%c1_107, %c1_108, %c0_109, %c0_110] : memref<9x2x4x2xbf16, #tpu.memory_space<vmem>>, vector<1x1x4x2xbf16>
    %83 = vector.shape_cast %82 : vector<1x1x4x2xbf16> to vector<4x2xbf16>
    %cst_111 = arith.constant dense<0.000000e+00> : vector<4x384xf32>
    %84 = tpu.matmul %83, %81, %cst_111 {dimension_numbers = #tpu.dot_dimension_numbers<[1], [0], [0], [1], [0, 0, 1, 1], [], []>} : vector<4x2xbf16>, vector<2x384xbf16>, vector<4x384xf32> -> vector<4x384xf32>
    %85 = arith.addf %79, %84 : vector<4x384xf32>
    %c0_112 = arith.constant 0 : index
    %c0_113 = arith.constant 0 : index
    %c1_114 = arith.constant 1 : index
    %c0_115 = arith.constant 0 : index
    %c2_116 = arith.constant 2 : index
    %86 = vector.load %arg1[%c0_112, %c0_113, %c1_114, %c0_115, %c2_116] : memref<1x1x2x2x512xbf16, #tpu.memory_space<vmem>>, vector<1x1x1x2x384xbf16>
    %87 = vector.shape_cast %86 : vector<1x1x1x2x384xbf16> to vector<2x384xbf16>
    %c2_117 = arith.constant 2 : index
    %c1_118 = arith.constant 1 : index
    %c0_119 = arith.constant 0 : index
    %c0_120 = arith.constant 0 : index
    %88 = vector.load %arg2[%c2_117, %c1_118, %c0_119, %c0_120] : memref<9x2x4x2xbf16, #tpu.memory_space<vmem>>, vector<1x1x4x2xbf16>
    %89 = vector.shape_cast %88 : vector<1x1x4x2xbf16> to vector<4x2xbf16>
    %cst_121 = arith.constant dense<0.000000e+00> : vector<4x384xf32>
    %90 = tpu.matmul %89, %87, %cst_121 {dimension_numbers = #tpu.dot_dimension_numbers<[1], [0], [0], [1], [0, 0, 1, 1], [], []>} : vector<4x2xbf16>, vector<2x384xbf16>, vector<4x384xf32> -> vector<4x384xf32>
    %91 = arith.addf %85, %90 : vector<4x384xf32>
    %c0_122 = arith.constant 0 : index
    %c0_123 = arith.constant 0 : index
    %c1_124 = arith.constant 1 : index
    %c0_125 = arith.constant 0 : index
    %c18_126 = arith.constant 18 : index
    %92 = vector.load %arg1[%c0_122, %c0_123, %c1_124, %c0_125, %c18_126] : memref<1x1x2x2x512xbf16, #tpu.memory_space<vmem>>, vector<1x1x1x2x384xbf16>
    %93 = vector.shape_cast %92 : vector<1x1x1x2x384xbf16> to vector<2x384xbf16>
    %c3_127 = arith.constant 3 : index
    %c1_128 = arith.constant 1 : index
    %c0_129 = arith.constant 0 : index
    %c0_130 = arith.constant 0 : index
    %94 = vector.load %arg2[%c3_127, %c1_128, %c0_129, %c0_130] : memref<9x2x4x2xbf16, #tpu.memory_space<vmem>>, vector<1x1x4x2xbf16>
    %95 = vector.shape_cast %94 : vector<1x1x4x2xbf16> to vector<4x2xbf16>
    %cst_131 = arith.constant dense<0.000000e+00> : vector<4x384xf32>
    %96 = tpu.matmul %95, %93, %cst_131 {dimension_numbers = #tpu.dot_dimension_numbers<[1], [0], [0], [1], [0, 0, 1, 1], [], []>} : vector<4x2xbf16>, vector<2x384xbf16>, vector<4x384xf32> -> vector<4x384xf32>
    %97 = arith.addf %91, %96 : vector<4x384xf32>
    %c0_132 = arith.constant 0 : index
    %c0_133 = arith.constant 0 : index
    %c1_134 = arith.constant 1 : index
    %c0_135 = arith.constant 0 : index
    %c19_136 = arith.constant 19 : index
    %98 = vector.load %arg1[%c0_132, %c0_133, %c1_134, %c0_135, %c19_136] : memref<1x1x2x2x512xbf16, #tpu.memory_space<vmem>>, vector<1x1x1x2x384xbf16>
    %99 = vector.shape_cast %98 : vector<1x1x1x2x384xbf16> to vector<2x384xbf16>
    %c4_137 = arith.constant 4 : index
    %c1_138 = arith.constant 1 : index
    %c0_139 = arith.constant 0 : index
    %c0_140 = arith.constant 0 : index
    %100 = vector.load %arg2[%c4_137, %c1_138, %c0_139, %c0_140] : memref<9x2x4x2xbf16, #tpu.memory_space<vmem>>, vector<1x1x4x2xbf16>
    %101 = vector.shape_cast %100 : vector<1x1x4x2xbf16> to vector<4x2xbf16>
    %cst_141 = arith.constant dense<0.000000e+00> : vector<4x384xf32>
    %102 = tpu.matmul %101, %99, %cst_141 {dimension_numbers = #tpu.dot_dimension_numbers<[1], [0], [0], [1], [0, 0, 1, 1], [], []>} : vector<4x2xbf16>, vector<2x384xbf16>, vector<4x384xf32> -> vector<4x384xf32>
    %103 = arith.addf %97, %102 : vector<4x384xf32>
    %c0_142 = arith.constant 0 : index
    %c0_143 = arith.constant 0 : index
    %c1_144 = arith.constant 1 : index
    %c0_145 = arith.constant 0 : index
    %c20_146 = arith.constant 20 : index
    %104 = vector.load %arg1[%c0_142, %c0_143, %c1_144, %c0_145, %c20_146] : memref<1x1x2x2x512xbf16, #tpu.memory_space<vmem>>, vector<1x1x1x2x384xbf16>
    %105 = vector.shape_cast %104 : vector<1x1x1x2x384xbf16> to vector<2x384xbf16>
    %c5_147 = arith.constant 5 : index
    %c1_148 = arith.constant 1 : index
    %c0_149 = arith.constant 0 : index
    %c0_150 = arith.constant 0 : index
    %106 = vector.load %arg2[%c5_147, %c1_148, %c0_149, %c0_150] : memref<9x2x4x2xbf16, #tpu.memory_space<vmem>>, vector<1x1x4x2xbf16>
    %107 = vector.shape_cast %106 : vector<1x1x4x2xbf16> to vector<4x2xbf16>
    %cst_151 = arith.constant dense<0.000000e+00> : vector<4x384xf32>
    %108 = tpu.matmul %107, %105, %cst_151 {dimension_numbers = #tpu.dot_dimension_numbers<[1], [0], [0], [1], [0, 0, 1, 1], [], []>} : vector<4x2xbf16>, vector<2x384xbf16>, vector<4x384xf32> -> vector<4x384xf32>
    %109 = arith.addf %103, %108 : vector<4x384xf32>
    %c0_152 = arith.constant 0 : index
    %c0_153 = arith.constant 0 : index
    %c1_154 = arith.constant 1 : index
    %c0_155 = arith.constant 0 : index
    %c36_156 = arith.constant 36 : index
    %110 = vector.load %arg1[%c0_152, %c0_153, %c1_154, %c0_155, %c36_156] : memref<1x1x2x2x512xbf16, #tpu.memory_space<vmem>>, vector<1x1x1x2x384xbf16>
    %111 = vector.shape_cast %110 : vector<1x1x1x2x384xbf16> to vector<2x384xbf16>
    %c6_157 = arith.constant 6 : index
    %c1_158 = arith.constant 1 : index
    %c0_159 = arith.constant 0 : index
    %c0_160 = arith.constant 0 : index
    %112 = vector.load %arg2[%c6_157, %c1_158, %c0_159, %c0_160] : memref<9x2x4x2xbf16, #tpu.memory_space<vmem>>, vector<1x1x4x2xbf16>
    %113 = vector.shape_cast %112 : vector<1x1x4x2xbf16> to vector<4x2xbf16>
    %cst_161 = arith.constant dense<0.000000e+00> : vector<4x384xf32>
    %114 = tpu.matmul %113, %111, %cst_161 {dimension_numbers = #tpu.dot_dimension_numbers<[1], [0], [0], [1], [0, 0, 1, 1], [], []>} : vector<4x2xbf16>, vector<2x384xbf16>, vector<4x384xf32> -> vector<4x384xf32>
    %115 = arith.addf %109, %114 : vector<4x384xf32>
    %c0_162 = arith.constant 0 : index
    %c0_163 = arith.constant 0 : index
    %c1_164 = arith.constant 1 : index
    %c0_165 = arith.constant 0 : index
    %c37_166 = arith.constant 37 : index
    %116 = vector.load %arg1[%c0_162, %c0_163, %c1_164, %c0_165, %c37_166] : memref<1x1x2x2x512xbf16, #tpu.memory_space<vmem>>, vector<1x1x1x2x384xbf16>
    %117 = vector.shape_cast %116 : vector<1x1x1x2x384xbf16> to vector<2x384xbf16>
    %c7_167 = arith.constant 7 : index
    %c1_168 = arith.constant 1 : index
    %c0_169 = arith.constant 0 : index
    %c0_170 = arith.constant 0 : index
    %118 = vector.load %arg2[%c7_167, %c1_168, %c0_169, %c0_170] : memref<9x2x4x2xbf16, #tpu.memory_space<vmem>>, vector<1x1x4x2xbf16>
    %119 = vector.shape_cast %118 : vector<1x1x4x2xbf16> to vector<4x2xbf16>
    %cst_171 = arith.constant dense<0.000000e+00> : vector<4x384xf32>
    %120 = tpu.matmul %119, %117, %cst_171 {dimension_numbers = #tpu.dot_dimension_numbers<[1], [0], [0], [1], [0, 0, 1, 1], [], []>} : vector<4x2xbf16>, vector<2x384xbf16>, vector<4x384xf32> -> vector<4x384xf32>
    %121 = arith.addf %115, %120 : vector<4x384xf32>
    %c0_172 = arith.constant 0 : index
    %c0_173 = arith.constant 0 : index
    %c1_174 = arith.constant 1 : index
    %c0_175 = arith.constant 0 : index
    %c38_176 = arith.constant 38 : index
    %122 = vector.load %arg1[%c0_172, %c0_173, %c1_174, %c0_175, %c38_176] : memref<1x1x2x2x512xbf16, #tpu.memory_space<vmem>>, vector<1x1x1x2x384xbf16>
    %123 = vector.shape_cast %122 : vector<1x1x1x2x384xbf16> to vector<2x384xbf16>
    %c8_177 = arith.constant 8 : index
    %c1_178 = arith.constant 1 : index
    %c0_179 = arith.constant 0 : index
    %c0_180 = arith.constant 0 : index
    %124 = vector.load %arg2[%c8_177, %c1_178, %c0_179, %c0_180] : memref<9x2x4x2xbf16, #tpu.memory_space<vmem>>, vector<1x1x4x2xbf16>
    %125 = vector.shape_cast %124 : vector<1x1x4x2xbf16> to vector<4x2xbf16>
    %cst_181 = arith.constant dense<0.000000e+00> : vector<4x384xf32>
    %126 = tpu.matmul %125, %123, %cst_181 {dimension_numbers = #tpu.dot_dimension_numbers<[1], [0], [0], [1], [0, 0, 1, 1], [], []>} : vector<4x2xbf16>, vector<2x384xbf16>, vector<4x384xf32> -> vector<4x384xf32>
    %127 = arith.addf %121, %126 : vector<4x384xf32>
    %128 = arith.truncf %127 : vector<4x384xf32> to vector<4x384xbf16>
    %c0_182 = arith.constant 0 : index
    %c1_183 = arith.constant 1 : index
    %c0_184 = arith.constant 0 : index
    %c0_185 = arith.constant 0 : index
    %129 = vector.load %arg4[%c0_182, %c1_183, %c0_184, %c0_185] : memref<1x2x4x384xbf16, #tpu.memory_space<vmem>>, vector<1x1x4x384xbf16>
    %130 = vector.shape_cast %129 : vector<1x1x4x384xbf16> to vector<4x384xbf16>
    %131 = vector.shape_cast %128 : vector<4x384xbf16> to vector<1x1x4x384xbf16>
    tpu.vector_store %arg4[%c0_182, %c1_183, %c0_184, %c0_185], %131 {strides = array<i32>} : memref<1x2x4x384xbf16, #tpu.memory_space<vmem>>, vector<1x1x4x384xbf16>,
    %132 = vector.broadcast %0 : vector<1x384xf32> to vector<4x384xf32>
    %133 = arith.mulf %127, %132 : vector<4x384xf32>
    %cst_186 = arith.constant dense<0.000000e+00> : vector<4xf32>
    %134 = vector.multi_reduction <add>, %133, %cst_186 [1] : vector<4x384xf32> to vector<4xf32>
    %135 = vector.shape_cast %134 : vector<4xf32> to vector<4x1xf32>
    %c0_187 = arith.constant 0 : index
    %c1_188 = arith.constant 1 : index
    %c0_189 = arith.constant 0 : index
    %c0_190 = arith.constant 0 : index
    %136 = vector.load %arg5[%c0_187, %c1_188, %c0_189, %c0_190] : memref<1x2x4x2xf32, #tpu.memory_space<vmem>>, vector<1x1x4x1xf32>
    %137 = vector.shape_cast %136 : vector<1x1x4x1xf32> to vector<4x1xf32>
    %138 = vector.shape_cast %135 : vector<4x1xf32> to vector<1x1x4x1xf32>
    tpu.vector_store %arg5[%c0_187, %c1_188, %c0_189, %c0_190], %138 {strides = array<i32>} : memref<1x2x4x2xf32, #tpu.memory_space<vmem>>, vector<1x1x4x1xf32>,
    %139 = arith.mulf %133, %133 : vector<4x384xf32>
    %cst_191 = arith.constant dense<0.000000e+00> : vector<4xf32>
    %140 = vector.multi_reduction <add>, %139, %cst_191 [1] : vector<4x384xf32> to vector<4xf32>
    %141 = vector.shape_cast %140 : vector<4xf32> to vector<4x1xf32>
    %c0_192 = arith.constant 0 : index
    %c1_193 = arith.constant 1 : index
    %c0_194 = arith.constant 0 : index
    %c1_195 = arith.constant 1 : index
    %142 = vector.load %arg5[%c0_192, %c1_193, %c0_194, %c1_195] : memref<1x2x4x2xf32, #tpu.memory_space<vmem>>, vector<1x1x4x1xf32>
    %143 = vector.shape_cast %142 : vector<1x1x4x1xf32> to vector<4x1xf32>
    %144 = vector.shape_cast %141 : vector<4x1xf32> to vector<1x1x4x1xf32>
    tpu.vector_store %arg5[%c0_192, %c1_193, %c0_194, %c1_195], %144 {strides = array<i32>} : memref<1x2x4x2xf32, #tpu.memory_space<vmem>>, vector<1x1x4x1xf32>,
    return
  }
  func.func @transform_0(%arg0: i32) -> (i32, i32, i32, i32, i32) {
    %c0_i32 = arith.constant 0 : i32
    %c0_i32_0 = arith.constant 0 : i32
    %c0_i32_1 = arith.constant 0 : i32
    %c0_i32_2 = arith.constant 0 : i32
    %c0_i32_3 = arith.constant 0 : i32
    return %arg0, %c0_i32, %c0_i32_0, %c0_i32_1, %c0_i32_2 : i32, i32, i32, i32, i32
  }
  func.func @transform_1(%arg0: i32) -> (i32, i32, i32, i32) {
    %c0_i32 = arith.constant 0 : i32
    %c0_i32_0 = arith.constant 0 : i32
    %c0_i32_1 = arith.constant 0 : i32
    %c0_i32_2 = arith.constant 0 : i32
    %c0_i32_3 = arith.constant 0 : i32
    return %c0_i32, %c0_i32_0, %c0_i32_1, %c0_i32_2 : i32, i32, i32, i32
  }
  func.func @transform_2(%arg0: i32) -> (i32, i32) {
    %c0_i32 = arith.constant 0 : i32
    %c0_i32_0 = arith.constant 0 : i32
    %c0_i32_1 = arith.constant 0 : i32
    return %c0_i32, %c0_i32_0 : i32, i32
  }
  func.func @transform_3(%arg0: i32) -> (i32, i32, i32, i32) {
    %c0_i32 = arith.constant 0 : i32
    %c0_i32_0 = arith.constant 0 : i32
    %c0_i32_1 = arith.constant 0 : i32
    %c0_i32_2 = arith.constant 0 : i32
    return %arg0, %c0_i32, %c0_i32_0, %c0_i32_1 : i32, i32, i32, i32
  }
  func.func @transform_4(%arg0: i32) -> (i32, i32, i32, i32) {
    %c0_i32 = arith.constant 0 : i32
    %c0_i32_0 = arith.constant 0 : i32
    %c0_i32_1 = arith.constant 0 : i32
    %c0_i32_2 = arith.constant 0 : i32
    return %arg0, %c0_i32, %c0_i32_0, %c0_i32_1 : i32, i32, i32, i32
  }
}

module attributes {stable_mosaic.version = 11 : i64} {
  func.func @_bn_swish_kernel(%arg0: i32, %arg1: i32, %arg2: memref<1x8x128xbf16, #tpu.memory_space<vmem>>, %arg3: memref<8x1xf32, #tpu.memory_space<vmem>>, %arg4: memref<8x1xf32, #tpu.memory_space<vmem>>, %arg5: memref<1x8x128xf32, #tpu.memory_space<vmem>>) attributes {dimension_semantics = [#tpu.dimension_semantics<parallel>, #tpu.dimension_semantics<parallel>], iteration_bounds = array<i64: 2, 3>, scalar_prefetch = 0 : i64, scratch_operands = 0 : i64, tpu.core_type = #tpu.core_type<tc>, window_params = [{transform_indices = @transform_0, window_bounds = array<i64: 1, 8, 128>}, {pipeline_mode = #tpu.pipeline_mode<synchronous>, transform_indices = @transform_1, window_bounds = array<i64: 8, 1>}, {pipeline_mode = #tpu.pipeline_mode<synchronous>, transform_indices = @transform_2, window_bounds = array<i64: 8, 1>}, {transform_indices = @transform_3, window_bounds = array<i64: 1, 8, 128>}]} {
    %c0 = arith.constant 0 : index
    %c0_0 = arith.constant 0 : index
    %c0_1 = arith.constant 0 : index
    %0 = vector.load %arg2[%c0, %c0_0, %c0_1] : memref<1x8x128xbf16, #tpu.memory_space<vmem>>, vector<1x8x128xbf16>
    %1 = vector.shape_cast %0 : vector<1x8x128xbf16> to vector<8x128xbf16>
    %2 = arith.extf %1 : vector<8x128xbf16> to vector<8x128xf32>
    %c0_2 = arith.constant 0 : index
    %c0_3 = arith.constant 0 : index
    %3 = vector.load %arg3[%c0_2, %c0_3] : memref<8x1xf32, #tpu.memory_space<vmem>>, vector<8x1xf32>
    %4 = vector.broadcast %3 : vector<8x1xf32> to vector<8x128xf32>
    %5 = arith.mulf %2, %4 : vector<8x128xf32>
    %c0_4 = arith.constant 0 : index
    %c0_5 = arith.constant 0 : index
    %6 = vector.load %arg4[%c0_4, %c0_5] : memref<8x1xf32, #tpu.memory_space<vmem>>, vector<8x1xf32>
    %7 = vector.broadcast %6 : vector<8x1xf32> to vector<8x128xf32>
    %8 = arith.addf %5, %7 : vector<8x128xf32>
    %9 = arith.negf %8 : vector<8x128xf32>
    %10 = math.exp %9 : vector<8x128xf32>
    %cst = arith.constant 1.000000e+00 : f32
    %11 = vector.broadcast %cst : f32 to vector<8x128xf32>
    %12 = arith.addf %11, %10 : vector<8x128xf32>
    %13 = arith.divf %11, %12 : vector<8x128xf32>
    %14 = arith.mulf %8, %13 : vector<8x128xf32>
    %c0_6 = arith.constant 0 : index
    %c0_7 = arith.constant 0 : index
    %c0_8 = arith.constant 0 : index
    %15 = vector.load %arg5[%c0_6, %c0_7, %c0_8] : memref<1x8x128xf32, #tpu.memory_space<vmem>>, vector<1x8x128xf32>
    %16 = vector.shape_cast %15 : vector<1x8x128xf32> to vector<8x128xf32>
    %17 = vector.shape_cast %14 : vector<8x128xf32> to vector<1x8x128xf32>
    tpu.vector_store %arg5[%c0_6, %c0_7, %c0_8], %17 {strides = array<i32>} : memref<1x8x128xf32, #tpu.memory_space<vmem>>, vector<1x8x128xf32>,
    return
  }
  func.func @transform_0(%arg0: i32, %arg1: i32) -> (i32, i32, i32) {
    %c0_i32 = arith.constant 0 : i32
    %c0_i32_0 = arith.constant 0 : i32
    return %arg0, %c0_i32, %arg1 : i32, i32, i32
  }
  func.func @transform_1(%arg0: i32, %arg1: i32) -> (i32, i32) {
    %c0_i32 = arith.constant 0 : i32
    %c0_i32_0 = arith.constant 0 : i32
    %c0_i32_1 = arith.constant 0 : i32
    return %c0_i32, %c0_i32_0 : i32, i32
  }
  func.func @transform_2(%arg0: i32, %arg1: i32) -> (i32, i32) {
    %c0_i32 = arith.constant 0 : i32
    %c0_i32_0 = arith.constant 0 : i32
    %c0_i32_1 = arith.constant 0 : i32
    return %c0_i32, %c0_i32_0 : i32, i32
  }
  func.func @transform_3(%arg0: i32, %arg1: i32) -> (i32, i32, i32) {
    %c0_i32 = arith.constant 0 : i32
    %c0_i32_0 = arith.constant 0 : i32
    return %arg0, %c0_i32, %arg1 : i32, i32, i32
  }
}

</mosaic_0001>

<bundles_post_ra>
// kernel: conv_block_forward.3
= control target key start
LH: loop header
LB: loop body
LE: loop exit
PB: predicated region body
PF: predicated region fallthrough
CT: control target
= control target key end

     0   :  { %s443_s12 = smov 0   ;;  %s445_s13 = smov 0   ;;  %s504_s0 = inlined_call_operand.vmem [shape: bf16[2,8,384], index: 0, kind: input, shape index: {}]   ;;  %s505_s1 = inlined_call_operand.vmem [shape: f32[8,1], index: 1, kind: input, shape index: {}]   ;;  %s506_s2 = inlined_call_operand.vmem [shape: f32[8,1], index: 2, kind: input, shape index: {}]   ;;  %s507_s3 = inlined_call_operand.vmem [shape: f32[2,8,384], index: 3, kind: output, shape index: {}]  }
   0x1   :  { %s447_s14 = smov 0   ;;  %s449_s15 = smov 0  }
   0x2   :  { %s451_s16 = smov 0  }
   0x3 LB: > { %s22_s17 = sadd.s32 1, %s412_s14  ;;  %s25_s18 = sadd.s32 1, %s416_s15  ;;  %s420_s16 = sphi %s451_s16, %s13_s16   ;;  %s416_s15 = sphi %s449_s15, %s511_s15   ;;  %s412_s14 = sphi %s447_s14, %s510_s14   ;;  %s408_s13 = sphi %s445_s13, %s509_s13   ;;  %s404_s12 = sphi %s443_s12, %s508_s12  }
   0x4   : > { %p23_p0 = scmp.ge.s32.totalorder %s22_s17, 3  ;;  %p329_p1 = scmp.ge.s32.totalorder %s420_s16, 1 }
   0x5   : > { %p156_p2 = scmp.lt.s32.totalorder %s420_s16, 7 }
   0x6   : > { %s513_s17 = smov (%p23_p0, %s22_s17), 0  ;;  %s515_s18 = smov (!%p23_p0, %s25_s18), %s416_s15 }
   0x7   : > { %p157_p3 = pnand %p329_p1, %p156_p2  ;;  %p27_p4 = scmp.ge.s32.totalorder %s515_s18, 2 }
   0x8   : > { %p186_p5 = scmp.lt.s32.totalorder (!%p157_p3), %s408_s13, 1  ;;  %p188_p6 = scmp.lt.s32.totalorder (!%p157_p3), %s404_s12, 2 }
   0x9   : > { %s517_s18 = smov (%p27_p4, %s515_s18), 0  ;;  %160 = sbr.rel (%p157_p3) target bundleno = 172 (0xac), region = 32 }
   0xe   : > { %v204_v0 = vld [vmem:[%s505_s1] sm:$0xff]  ;;  %v422_v1 = vmov 0   ;;  %s519_s13 = smov (!%p186_p5, %s408_s13), 1  ;;  %s521_s12 = smov (!%p188_p6, %s404_s12), 2 }
   0xf   : > { %377 = vset.pattern.permute.xlu0 %v422_v1  ;;  %v211_v2 = vld [vmem:[%s506_s2] sm:$0xff]  ;;  %s335_s23 = smul.u32 3, %s519_s13 }
  0x10   : > { %207 = vperm.xlu0 %377, %v204_v0  }
  0x11   : > { %s479_s24 = sadd.s32 %s335_s23, %s521_s12 }
  0x12   : > { %s330_s25 = sshll.u32 %s479_s24, 2  ;;  %s331_s29 = sshll.u32 %s479_s24, 3 }
  0x13   : > { %s193_s28 = scalar_lea.vmem %s504_s0, %s330_s25  ;;  %s201_s5 = scalar_lea.vmem %s507_s3, %s331_s29 }
  0x14   : > { %v202_v4 = vld [vmem:[%s193_s28] sm:$0xf] }
  0x15   : > { %v203_v5 = vunpack.c.l.bf16 %v202_v4 }
  0x18   : > { %214 = vperm.xlu0 %377, %v211_v2  }
  0x82   : > { %v208_v3 = vpop.permute.xlu0 %207 }
  0x83   : > { %v210_v6 = vmul.f32 %v208_v3, %v203_v5 }
  0x8a   : > { %v215_v7 = vpop.permute.xlu0 %214 }
  0x8b   : > { %v217_v8 = vadd.f32 %v215_v7, %v210_v6 }
  0x8d   : > { %v332_v9 = vmul.f32 -1.442695, %v217_v8 }
  0x8f   : > { %378 = vpow2.f32 %v332_v9 }
  0x95   : > { %v379_v10 = vpop.eup %378 }
  0x96   : > { %v221_v11 = vadd.f32 1.0, %v379_v10 }
  0x98   : > { %380 = vrcp.f32 %v221_v11  ;;  %v233_v15 = vand.u32 2147483648, %v221_v11  ;;  %v231_v17 = vand.u32 2147483647, %v221_v11  ;;  %vm227_vm1 = vweird.f32 %v221_v11 }
  0x9a   : > { %v234_v19 = vor.u32 1.1754944e-38, %v233_v15  ;;  %vm232_vm3 = vcmp.eq.f32.partialorder %v231_v17, 8.507059e+37 }
  0x9e   : > { %v381_v12 = vpop.eup %380 }
  0x9f   : > { %v223_v13 = vmul.f32 %v381_v12, %v221_v11  ;;  %vm228_vm0 = vweird.f32 %v381_v12 }
  0xa0   : > { %vm229_vm2 = vmor %vm227_vm1, %vm228_vm0 }
  0xa1   : > { %v224_v14 = vsub.f32 1.0, %v223_v13 }
  0xa3   : > { %v225_v16 = vmul.f32 %v381_v12, %v224_v14 }
  0xa5   : > { %v226_v18 = vadd.f32 %v381_v12, %v225_v16 }
  0xa7   : > { %v230_v20 = vsel %vm229_vm2, %v381_v12, %v226_v18 }
  0xa8   : > { %v235_v21 = vsel %vm232_vm3, %v234_v19, %v230_v20 }
  0xa9   : > { %v237_v22 = vmul.f32 %v235_v21, %v217_v8 }
  0xab   : > { %238 = vst [vmem:[%s201_s5] sm:$0xff] %v237_v22 }
  0xac PF: > { %s13_s16 = sadd.s32 1, %s420_s16   ;;  %s508_s12 = smov %s412_s14 }
  0xad   : > { %p10_p7 = scmp.ge.s32.totalorder %s13_s16, 8   ;;  %s509_s13 = smov %s416_s15 }
  0xae   : > { %s510_s14 = smov %s513_s17  ;;  %s511_s15 = smov %s517_s18 }
  0xaf   :  { %12 = sbr.rel (!%p10_p7) target bundleno = 3 (0x3), region = 62 }

// kernel: conv_block_forward.2
= control target key start
LH: loop header
LB: loop body
LE: loop exit
PB: predicated region body
PF: predicated region fallthrough
CT: control target
= control target key end

     0   :  { %s1905_s15 = smov 0   ;;  %s2304_s0 = inlined_call_operand.vmem [shape: bf16[2,1,2,2,512], index: 0, kind: input, shape index: {}]   ;;  %s2305_s1 = inlined_call_operand.vmem [shape: bf16[9,2,4,2], index: 1, kind: input, shape index: {}]   ;;  %s2306_s2 = inlined_call_operand.vmem [shape: f32[1,384], index: 2, kind: input, shape index: {}]   ;;  %s2307_s3 = inlined_call_operand.vmem [shape: bf16[2,2,4,384], index: 3, kind: output, shape index: {0}]   ;;  %s2308_s4 = inlined_call_operand.vmem [shape: f32[2,2,4,2], index: 4, kind: output, shape index: {1}]  }
   0x1 LB: > { %s1752_s16 = sadd.s32 4294967295, %s1870_s15   ;;  %p1756_p0 = scmp.ge.s32.totalorder %s1870_s15, 1  ;;  %s1870_s15 = sphi %s1905_s15, %s15_s15  }
   0x2   : > { %p164_p1 = scmp.lt.s32.totalorder %s1870_s15, 3 }
   0x4   : > { %p165_p2 = pnand %p1756_p0, %p164_p1 }
   0x5   : > { %p194_p3 = scmp.lt.s32.totalorder (!%p165_p2), %s1752_s16, 1  ;;  %s1872_s21 = smov (!%p165_p2), 127  }
   0x6   : > { %168 = sbr.rel (%p165_p2) target bundleno = 620 (0x26c), region = 32  ;;  %s1873_s22 = smov (!%p165_p2), 126  }
   0x7   : > { %s1874_s23 = smov (!%p165_p2), 110   ;;  %s1875_s24 = smov (!%p165_p2), 109  }
   0x8   : > { %s1876_s25 = smov (!%p165_p2), 108   ;;  %s1877_s26 = smov (!%p165_p2), 92  }
   0x9   : > { %s1878_s27 = smov (!%p165_p2), 91   ;;  %s1879_s28 = smov (!%p165_p2), 90  }
   0xb   : > { %s2310_s16 = smov (!%p194_p3, %s1752_s16), 1  ;;  %vm241_vm0 = vcmask 1040384   ;;  %v1983_v55 = vld [vmem:[%s2305_s1] sm:$0x3]  ;;  %vm237_vm1 = vcmask 15360   ;;  %vm233_vm2 = vcmask 1039360  }
   0xc   : > { %s1757_s17 = sshll.u32 %s2310_s16, 3  ;;  %vm364_vm3 = vcmask 1031168   ;;  %vm443_vm4 = vcmask 900096   ;;  %vm522_vm5 = vcmask 891904   ;;  %vm601_vm6 = vcmask 883712  }
   0xd   : > { %s1921_s20 = scalar_lea.vmem %s2304_s0, %s1757_s17  ;;  %vm680_vm7 = vcmask 752640   ;;  %vm759_vm8 = vcmask 744448   ;;  %vm838_vm9 = vcmask 736256   ;;  %vm911_vm10 = vcmask 1043456  }
   0xe   : > { %v212_v0 = vld [vmem:[%s1921_s20] sm:$0xf]  ;;  %v1798_v40 = vld [vmem:[%s1921_s20 + $0x4] sm:$0xf]  ;;  %vm903_vm11 = vcmask 1041408   ;;  %vm907_vm12 = vcmask 1045508  }
   0xf   : > { %216 = vst [vmem:[#allocation1] ss:$9 sm:$0xff] %v212_v0  ;;  %v210_v1 = vld [vmem:[%s1921_s20] sm:$0x7]  ;;  %v1796_v45 = vld [vmem:[%s1921_s20 + $0x4] sm:$0x7] }
  0x10   : > { %v343_v6 = vld [vmem:[%s1921_s20] sm:$0xf]  ;;  %v1806_v51 = vld [vmem:[%s1921_s20 + $0x4] sm:$0xf]  ;;  %vm932_vm13 = vcmask 3072   ;;  %vm944_vm14 = vcmask 11272  }
  0x11   : > { %v422_v10 = vld [vmem:[%s1921_s20] sm:$0xf]  ;;  %v1811_v56 = vld [vmem:[%s1921_s20 + $0x4] sm:$0xf] }
  0x12   : > { %v501_v15 = vld [vmem:[%s1921_s20] sm:$0xf]  ;;  %v1816_v61 = vld [vmem:[%s1921_s20 + $0x4] sm:$0xf] }
  0x13   : > { %v580_v20 = vld [vmem:[%s1921_s20] sm:$0xf] }
  0x14   : > { %v659_v25 = vld [vmem:[%s1921_s20] sm:$0xf] }
  0x15   : > { %v738_v30 = vld [vmem:[%s1921_s20] sm:$0xf] }
  0x16   : > { %v221_v2 = vld [vmem:[#allocation1 + $0x12] sm:$0xff]  ;;  %v217_v3 = vld [vmem:[#allocation1] sm:$0xff]  ;;  %v219_v5 = vld [vmem:[#allocation1 + $0x9] sm:$0xff] }
  0x17   : > { %v223_v4 = vld [vmem:[#allocation1 + $0x1b] sm:$0xff]  ;;  %229 = vrot.lane.b32.xlu1 %v221_v2, %s1872_s21  ;;  %225 = vrot.lane.b32.xlu0 %v217_v3, %s1872_s21  ;;  %v1821_v3 = vld [vmem:[%s1921_s20 + $0x4] sm:$0xf] }
  0x18   : > { %291 = vst [vmem:[#allocation1] ss:$9 sm:$0xff] %v210_v1  ;;  %v817_v35 = vld [vmem:[%s1921_s20] sm:$0xf] }
  0x1f   : > { %231 = vrot.lane.b32.xlu1 %v223_v4, %s1872_s21  ;;  %227 = vrot.lane.b32.xlu0 %v219_v5, %s1872_s21  ;;  %v1930_v7 = vld [vmem:[#allocation1] sm:$0xff]  ;;  %v1932_v8 = vld [vmem:[#allocation1 + $0x9] sm:$0xff]  ;;  %v1934_v9 = vld [vmem:[#allocation1 + $0x12] sm:$0xff] }
  0x20   : > { %347 = vst [vmem:[#allocation1] ss:$9 sm:$0xff] %v343_v6  ;;  %v298_v50 = vsel %vm241_vm0, %v1930_v7, 0 }
  0x21   : > { %311 = vmatpush.bf16.msra.mxu3 %v298_v50 }
  0x24   : > { %1765 = vmatmul.msk.bf16.vlgmr.msra.gmra.mxu3 %vm237_vm1, %v1983_v55 }
  0x27   : > { %v352_v11 = vld [vmem:[#allocation1 + $0x12] sm:$0xff]  ;;  %v350_v12 = vld [vmem:[#allocation1 + $0x9] sm:$0xff]  ;;  %v354_v13 = vld [vmem:[#allocation1 + $0x1b] sm:$0xff] }
  0x28   : > { %360 = vrot.lane.b32.xlu0 %v352_v11, %s1873_s22  ;;  %362 = vrot.lane.b32.xlu1 %v354_v13, %s1873_s22  ;;  %v348_v14 = vld [vmem:[#allocation1] sm:$0xff] }
  0x29   : > { %356 = vrot.lane.b32.xlu2 %v348_v14, %s1873_s22  ;;  %426 = vst [vmem:[#allocation1] ss:$9 sm:$0xff] %v422_v10 }
  0x30   : > { %v431_v16 = vld [vmem:[#allocation1 + $0x12] sm:$0xff]  ;;  %v433_v17 = vld [vmem:[#allocation1 + $0x1b] sm:$0xff]  ;;  %v429_v19 = vld [vmem:[#allocation1 + $0x9] sm:$0xff] }
  0x31   : > { %v427_v18 = vld [vmem:[#allocation1] sm:$0xff]  ;;  %439 = vrot.lane.b32.xlu1 %v431_v16, %s1874_s23  ;;  %358 = vrot.lane.b32.xlu2 %v350_v12, %s1873_s22  ;;  %v300_v16 = vsel %vm241_vm0, %v1932_v8, 0 }
  0x32   : > { %437 = vrot.lane.b32.xlu0 %v429_v19, %s1874_s23  ;;  %505 = vst [vmem:[#allocation1] ss:$9 sm:$0xff] %v501_v15 }
  0x39   : > { %v506_v21 = vld [vmem:[#allocation1] sm:$0xff]  ;;  %v510_v22 = vld [vmem:[#allocation1 + $0x12] sm:$0xff]  ;;  %v508_v23 = vld [vmem:[#allocation1 + $0x9] sm:$0xff]  ;;  %435 = vrot.lane.b32.xlu2 %v427_v18, %s1874_s23 }
  0x3a   : > { %514 = vrot.lane.b32.xlu0 %v506_v21, %s1875_s24  ;;  %516 = vrot.lane.b32.xlu1 %v508_v23, %s1875_s24  ;;  %v512_v24 = vld [vmem:[#allocation1 + $0x1b] sm:$0xff] }
  0x3b   : > { %584 = vst [vmem:[#allocation1] ss:$9 sm:$0xff] %v580_v20  ;;  %v302_v20 = vsel %vm241_vm0, %v1934_v9, 0  ;;  %v1826_v9 = vld [vmem:[%s1921_s20 + $0x4] sm:$0xf] }
  0x41   : > { %441 = vrot.lane.b32.xlu2 %v433_v17, %s1874_s23 }
  0x42   : > { %520 = vrot.lane.b32.xlu0 %v512_v24, %s1875_s24  ;;  %v585_v26 = vld [vmem:[#allocation1] sm:$0xff]  ;;  %v587_v27 = vld [vmem:[#allocation1 + $0x9] sm:$0xff]  ;;  %v589_v28 = vld [vmem:[#allocation1 + $0x12] sm:$0xff] }
  0x43   : > { %593 = vrot.lane.b32.xlu1 %v585_v26, %s1876_s25  ;;  %v591_v29 = vld [vmem:[#allocation1 + $0x1b] sm:$0xff] }
  0x44   : > { %663 = vst [vmem:[#allocation1] ss:$9 sm:$0xff] %v659_v25  ;;  %v1761_v25 = vld [vmem:[%s2305_s1 + $0x4] sm:$0x3] }
  0x49   : > { %518 = vrot.lane.b32.xlu2 %v510_v22, %s1875_s24 }
  0x4a   : > { %597 = vrot.lane.b32.xlu0 %v589_v28, %s1876_s25 }
  0x4b   : > { %599 = vrot.lane.b32.xlu1 %v591_v29, %s1876_s25  ;;  %v668_v31 = vld [vmem:[#allocation1 + $0x12] sm:$0xff]  ;;  %v670_v32 = vld [vmem:[#allocation1 + $0x1b] sm:$0xff]  ;;  %v666_v34 = vld [vmem:[#allocation1 + $0x9] sm:$0xff] }
  0x4c   : > { %v664_v33 = vld [vmem:[#allocation1] sm:$0xff] }
  0x4d   : > { %742 = vst [vmem:[#allocation1] ss:$9 sm:$0xff] %v738_v30 }
  0x51   : > { %595 = vrot.lane.b32.xlu2 %v587_v27, %s1876_s25 }
  0x52   : > { %674 = vrot.lane.b32.xlu0 %v666_v34, %s1877_s26 }
  0x53   : > { %676 = vrot.lane.b32.xlu1 %v668_v31, %s1877_s26 }
  0x54   : > { %v747_v36 = vld [vmem:[#allocation1 + $0x12] sm:$0xff]  ;;  %v745_v37 = vld [vmem:[#allocation1 + $0x9] sm:$0xff]  ;;  %v743_v38 = vld [vmem:[#allocation1] sm:$0xff] }
  0x55   : > { %v749_v39 = vld [vmem:[#allocation1 + $0x1b] sm:$0xff] }
  0x56   : > { %821 = vst [vmem:[#allocation1] ss:$9 sm:$0xff] %v817_v35 }
  0x59   : > { %672 = vrot.lane.b32.xlu2 %v664_v33, %s1877_s26 }
  0x5a   : > { %751 = vrot.lane.b32.xlu0 %v743_v38, %s1878_s27 }
  0x5b   : > { %753 = vrot.lane.b32.xlu1 %v745_v37, %s1878_s27  ;;  %v1768_v37 = vld [vmem:[%s2305_s1 + $0x8] sm:$0x3] }
  0x5d   : > { %v822_v41 = vld [vmem:[#allocation1] sm:$0xff]  ;;  %v824_v42 = vld [vmem:[#allocation1 + $0x9] sm:$0xff]  ;;  %v826_v43 = vld [vmem:[#allocation1 + $0x12] sm:$0xff] }
  0x5e   : > { %v828_v44 = vld [vmem:[#allocation1 + $0x1b] sm:$0xff] }
  0x5f   : > { %954 = vst [vmem:[#allocation1] ss:$9 sm:$0xff] %v1798_v40 }
  0x61   : > { %678 = vrot.lane.b32.xlu2 %v670_v32, %s1877_s26 }
  0x62   : > { %757 = vrot.lane.b32.xlu0 %v749_v39, %s1878_s27 }
  0x63   : > { %830 = vrot.lane.b32.xlu1 %v822_v41, %s1879_s28 }
  0x66   : > { %v961_v46 = vld [vmem:[#allocation1 + $0x1b] sm:$0xff]  ;;  %v959_v47 = vld [vmem:[#allocation1 + $0x12] sm:$0xff]  ;;  %v957_v48 = vld [vmem:[#allocation1 + $0x9] sm:$0xff] }
  0x67   : > { %v955_v49 = vld [vmem:[#allocation1] sm:$0xff] }
  0x68   : > { %1026 = vst [vmem:[#allocation1] ss:$9 sm:$0xff] %v1796_v45 }
  0x69   : > { %755 = vrot.lane.b32.xlu2 %v747_v36, %s1878_s27 }
  0x6a   : > { %834 = vrot.lane.b32.xlu0 %v826_v43, %s1879_s28 }
  0x6b   : > { %836 = vrot.lane.b32.xlu1 %v828_v44, %s1879_s28 }
  0x6f   : > { %v1974_v52 = vld [vmem:[#allocation1] sm:$0xff]  ;;  %v1976_v53 = vld [vmem:[#allocation1 + $0x9] sm:$0xff]  ;;  %v1978_v54 = vld [vmem:[#allocation1 + $0x12] sm:$0xff] }
  0x70   : > { %1082 = vst [vmem:[#allocation1] ss:$9 sm:$0xff] %v1806_v51 }
  0x71   : > { %832 = vrot.lane.b32.xlu2 %v824_v42, %s1879_s28 }
  0x72   : > { %965 = vrot.lane.b32.xlu0 %v957_v48, %s1872_s21 }
  0x73   : > { %967 = vrot.lane.b32.xlu1 %v959_v47, %s1872_s21 }
  0x77   : > { %v1087_v57 = vld [vmem:[#allocation1 + $0x12] sm:$0xff]  ;;  %v1083_v58 = vld [vmem:[#allocation1] sm:$0xff]  ;;  %v1085_v59 = vld [vmem:[#allocation1 + $0x9] sm:$0xff] }
  0x78   : > { %v1089_v60 = vld [vmem:[#allocation1 + $0x1b] sm:$0xff] }
  0x79   : > { %963 = vrot.lane.b32.xlu2 %v955_v49, %s1872_s21  ;;  %1160 = vst [vmem:[#allocation1] ss:$9 sm:$0xff] %v1811_v56 }
  0x7a   : > { %1091 = vrot.lane.b32.xlu0 %v1083_v58, %s1873_s22 }
  0x7b   : > { %1093 = vrot.lane.b32.xlu1 %v1085_v59, %s1873_s22 }
  0x80   : > { %v1163_v62 = vld [vmem:[#allocation1 + $0x9] sm:$0xff]  ;;  %v1161_v63 = vld [vmem:[#allocation1] sm:$0xff]  ;;  %v1165_v0 = vld [vmem:[#allocation1 + $0x12] sm:$0xff] }
  0x81   : > { %969 = vrot.lane.b32.xlu2 %v961_v46, %s1872_s21  ;;  %v1167_v1 = vld [vmem:[#allocation1 + $0x1b] sm:$0xff]  ;;  %v1831_v46 = vld [vmem:[%s1921_s20 + $0x4] sm:$0xf]  ;;  %s1847_s21 = smul.u32 12, %s2310_s16 }
  0x82   : > { %1097 = vrot.lane.b32.xlu0 %v1089_v60, %s1873_s22  ;;  %1238 = vst [vmem:[#allocation1] ss:$9 sm:$0xff] %v1816_v61 }
  0x83   : > { %v357_v2 = vpop.permute.xlu2 %356  ;;  %1169 = vrot.lane.b32.xlu1 %v1161_v63, %s1874_s23  ;;  %v1836_v63 = vld [vmem:[%s1921_s20 + $0x4] sm:$0xf] }
  0x89   : > { %v230_v4 = vpop.permute.xlu1 %229  ;;  %v226_v5 = vpop.permute.xlu0 %225  ;;  %v1239_v6 = vld [vmem:[#allocation1] sm:$0xff]  ;;  %1095 = vrot.lane.b32.xlu2 %v1087_v57, %s1873_s22  ;;  %v1241_v10 = vld [vmem:[#allocation1 + $0x9] sm:$0xff]  ;;  %v1243_v11 = vld [vmem:[#allocation1 + $0x12] sm:$0xff] }
  0x8a   : > { %v1245_v7 = vld [vmem:[#allocation1 + $0x1b] sm:$0xff]  ;;  %1173 = vrot.lane.b32.xlu0 %v1165_v0, %s1874_s23 }
  0x8b   : > { %v359_v12 = vpop.permute.xlu2 %358  ;;  %1175 = vrot.lane.b32.xlu1 %v1167_v1, %s1874_s23  ;;  %1316 = vst [vmem:[#allocation1] ss:$9 sm:$0xff] %v1821_v3 }
  0x8c   : > { %v365_v13 = vsel %vm364_vm3, %v357_v2, %v359_v12 }
  0x8d   : > { %v372_v23 = vsel %vm241_vm0, %v365_v13, 0 }
  0x91   : > { %v232_v14 = vpop.permute.xlu1 %231  ;;  %v228_v15 = vpop.permute.xlu0 %227  ;;  %1171 = vrot.lane.b32.xlu2 %v1163_v62, %s1874_s23 }
  0x92   : > { %v234_v17 = vsel %vm233_vm2, %v226_v5, %v228_v15  ;;  %v235_v18 = vsel %vm233_vm2, %v228_v15, %v230_v4  ;;  %v236_v19 = vsel %vm233_vm2, %v230_v4, %v232_v14  ;;  %1249 = vrot.lane.b32.xlu0 %v1241_v10, %s1875_s24  ;;  %v1321_v26 = vld [vmem:[#allocation1 + $0x12] sm:$0xff]  ;;  %v1317_v27 = vld [vmem:[#allocation1] sm:$0xff]  ;;  %v1319_v28 = vld [vmem:[#allocation1 + $0x9] sm:$0xff] }
  0x93   : > { %v243_v21 = vsel %vm241_vm0, %v234_v17, 0  ;;  %v246_v22 = vsel %vm241_vm0, %v235_v18, 0  ;;  %v249_v8 = vsel %vm241_vm0, %v236_v19, 0  ;;  %v436_v24 = vpop.permute.xlu2 %435  ;;  %1251 = vrot.lane.b32.xlu1 %v1243_v11, %s1875_s24  ;;  %v1323_v29 = vld [vmem:[#allocation1 + $0x1b] sm:$0xff]  ;;  %v1780_v18 = vld [vmem:[%s2305_s1 + $0x14] sm:$0x3] }
  0x94   : > { %258 = vmatpush.bf16.msra.mxu0 %v243_v21  ;;  %271 = vmatpush.bf16.msra.mxu1 %v246_v22  ;;  %1394 = vst [vmem:[#allocation1] ss:$9 sm:$0xff] %v1826_v9 }
  0x95   : > { %284 = vmatpush.bf16.msra.mxu2 %v249_v8 }
  0x97   : > { %1762 = vmatmul.msk.bf16.vlgmr.msra.gmra.mxu0 %vm237_vm1, %v1761_v25  ;;  %1763 = vmatmul.msk.bf16.vlgmr.msra.gmra.mxu1 %vm237_vm1, %v1761_v25 }
  0x98   : > { %324 = vmatpush.bf16.msrb.mxu0 %v300_v16  ;;  %337 = vmatpush.bf16.msrb.mxu1 %v302_v20 }
  0x99   : > { %387 = vmatpush.bf16.msrb.mxu2 %v372_v23  ;;  %1247 = vrot.lane.b32.xlu2 %v1239_v6, %s1875_s24  ;;  %v1776_v23 = vld [vmem:[%s2305_s1 + $0x10] sm:$0x3] }
  0x9a   : > { %1764 = vmatmul.msk.bf16.vlgmr.msra.gmra.mxu2 %vm237_vm1, %v1761_v25  ;;  %v361_v30 = vpop.permute.xlu0 %360  ;;  %v363_v31 = vpop.permute.xlu1 %362  ;;  %1325 = vrot.lane.b32.xlu0 %v1317_v27, %s1876_s25 }
  0x9b   : > { %v367_v32 = vsel %vm364_vm3, %v361_v30, %v363_v31  ;;  %v366_v33 = vsel %vm364_vm3, %v359_v12, %v361_v30  ;;  %v442_v34 = vpop.permute.xlu2 %441  ;;  %1327 = vrot.lane.b32.xlu1 %v1319_v28, %s1876_s25  ;;  %v1395_v38 = vld [vmem:[#allocation1] sm:$0xff]  ;;  %v1397_v49 = vld [vmem:[#allocation1 + $0x9] sm:$0xff]  ;;  %v1399_v50 = vld [vmem:[#allocation1 + $0x12] sm:$0xff] }
  0x9c   : > { %v378_v35 = vsel %vm241_vm0, %v367_v32, 0  ;;  %v375_v36 = vsel %vm241_vm0, %v366_v33, 0  ;;  %v1401_v51 = vld [vmem:[#allocation1 + $0x1b] sm:$0xff]  ;;  %v1784_v33 = vld [vmem:[%s2305_s1 + $0x18] sm:$0x3] }
  0x9d   : > { %400 = vmatpush.bf16.msrb.mxu3 %v375_v36  ;;  %413 = vmatpush.bf16.msra.mxu0 %v378_v35  ;;  %1472 = vst [vmem:[#allocation1] ss:$9 sm:$0xff] %v1831_v46 }
  0xa0   : > { %1770 = vmatmul.msk.bf16.vlgmr.msrb.gmra.mxu3 %vm237_vm1, %v1768_v37 }
  0xa1   : > { %1253 = vrot.lane.b32.xlu2 %v1245_v7, %s1875_s24  ;;  %s2273_s24 = scalar_lea.vmem %s2307_s3, %s1847_s21 }
  0xa2   : > { %1331 = vrot.lane.b32.xlu0 %v1323_v29, %s1876_s25 }
  0xa3   : > { %v440_v39 = vpop.permute.xlu1 %439  ;;  %v519_v40 = vpop.permute.xlu2 %518  ;;  %1403 = vrot.lane.b32.xlu1 %v1395_v38, %s1877_s26 }
  0xa4   : > { %v438_v41 = vpop.permute.xlu0 %437  ;;  %v446_v42 = vsel %vm443_vm4, %v440_v39, %v442_v34  ;;  %v1473_v0 = vld [vmem:[#allocation1] sm:$0xff]  ;;  %v1477_v2 = vld [vmem:[#allocation1 + $0x12] sm:$0xff]  ;;  %v1475_v3 = vld [vmem:[#allocation1 + $0x9] sm:$0xff] }
  0xa5   : > { %v444_v43 = vsel %vm443_vm4, %v436_v24, %v438_v41  ;;  %v445_v44 = vsel %vm443_vm4, %v438_v41, %v440_v39  ;;  %v457_v45 = vsel %vm241_vm0, %v446_v42, 0  ;;  %v1479_v1 = vld [vmem:[#allocation1 + $0x1b] sm:$0xff] }
  0xa6   : > { %v451_v47 = vsel %vm241_vm0, %v444_v43, 0  ;;  %v454_v48 = vsel %vm241_vm0, %v445_v44, 0  ;;  %492 = vmatpush.bf16.msra.mxu3 %v457_v45  ;;  %1550 = vst [vmem:[#allocation1] ss:$9 sm:$0xff] %v1836_v63 }
  0xa7   : > { %1766 = vmatmul.msk.bf16.vlgmr.msrb.gmra.mxu0 %vm237_vm1, %v1983_v55  ;;  %1767 = vmatmul.msk.bf16.vlgmr.msrb.gmra.mxu1 %vm237_vm1, %v1983_v55  ;;  %v1772_v55 = vld [vmem:[%s2305_s1 + $0xc] sm:$0x3] }
  0xa8   : > { %466 = vmatpush.bf16.msra.mxu1 %v451_v47  ;;  %479 = vmatpush.bf16.msra.mxu2 %v454_v48 }
  0xa9   : > { %1329 = vrot.lane.b32.xlu2 %v1321_v26, %s1876_s25 }
  0xaa   : > { %1769 = vmatmul.msk.bf16.vlgmr.msrb.gmra.mxu2 %vm237_vm1, %v1768_v37  ;;  %1407 = vrot.lane.b32.xlu0 %v1399_v50, %s1877_s26 }
  0xab   : > { %v596_v56 = vpop.permute.xlu2 %595  ;;  %1409 = vrot.lane.b32.xlu1 %v1401_v51, %s1877_s26 }
  0xac   : > { %v515_v57 = vpop.permute.xlu0 %514  ;;  %v517_v58 = vpop.permute.xlu1 %516 }
  0xad   : > { %v523_v59 = vsel %vm522_vm5, %v515_v57, %v517_v58  ;;  %v524_v60 = vsel %vm522_vm5, %v517_v58, %v519_v40  ;;  %v1551_v13 = vld [vmem:[#allocation1] sm:$0xff]  ;;  %v1553_v14 = vld [vmem:[#allocation1 + $0x9] sm:$0xff] }
  0xae   : > { %v530_v61 = vsel %vm241_vm0, %v523_v59, 0  ;;  %v533_v62 = vsel %vm241_vm0, %v524_v60, 0  ;;  %v1557_v8 = vld [vmem:[#allocation1 + $0x1b] sm:$0xff] }
  0xaf   : > { %545 = vmatpush.bf16.msrb.mxu0 %v530_v61  ;;  %558 = vmatpush.bf16.msrb.mxu1 %v533_v62 }
  0xb0   : > { %1775 = vmatmul.msk.bf16.vlgmr.msra.gmra.mxu3 %vm237_vm1, %v1772_v55 }
  0xb1   : > { %1405 = vrot.lane.b32.xlu2 %v1397_v49, %s1877_s26  ;;  %v1788_v49 = vld [vmem:[%s2305_s1 + $0x1c] sm:$0x3] }
  0xb2   : > { %1483 = vrot.lane.b32.xlu0 %v1475_v3, %s1878_s27  ;;  %v1035_v3 = vsel %vm241_vm0, %v1976_v53, 0 }
  0xb3   : > { %v673_v4 = vpop.permute.xlu2 %672  ;;  %1485 = vrot.lane.b32.xlu1 %v1477_v2, %s1878_s27 }
  0xb4   : > { %v521_v5 = vpop.permute.xlu0 %520 }
  0xb5   : > { %v525_v6 = vsel %vm522_vm5, %v519_v40, %v521_v5  ;;  %v594_v7 = vpop.permute.xlu1 %593  ;;  %v1555_v40 = vld [vmem:[#allocation1 + $0x12] sm:$0xff] }
  0xb6   : > { %v536_v10 = vsel %vm241_vm0, %v525_v6, 0  ;;  %v602_v11 = vsel %vm601_vm6, %v594_v7, %v596_v56  ;;  %v1799_v7 = vld [vmem:[%s2305_s1 + $0x6] sm:$0x3] }
  0xb7   : > { %1771 = vmatmul.msk.bf16.vlgmr.msra.gmra.mxu0 %vm237_vm1, %v1768_v37  ;;  %1773 = vmatmul.msk.bf16.vlgmr.msra.gmra.mxu1 %vm237_vm1, %v1772_v55  ;;  %v609_v12 = vsel %vm241_vm0, %v602_v11, 0  ;;  %v1792_v11 = vld [vmem:[%s2305_s1 + $0x20] sm:$0x3] }
  0xb8   : > { %624 = vmatpush.bf16.msrb.mxu3 %v609_v12  ;;  %571 = vmatpush.bf16.msrb.mxu2 %v536_v10 }
  0xb9   : > { %1481 = vrot.lane.b32.xlu2 %v1473_v0, %s1878_s27 }
  0xba   : > { %1774 = vmatmul.msk.bf16.vlgmr.msra.gmra.mxu2 %vm237_vm1, %v1772_v55  ;;  %1559 = vrot.lane.b32.xlu0 %v1551_v13, %s1879_s28 }
  0xbb   : > { %1561 = vrot.lane.b32.xlu1 %v1553_v14, %s1879_s28  ;;  %v679_v16 = vpop.permute.xlu2 %678  ;;  %v1037_v14 = vsel %vm241_vm0, %v1978_v54, 0 }
  0xbc   : > { %v598_v15 = vpop.permute.xlu0 %597 }
  0xbd   : > { %v603_v17 = vsel %vm601_vm6, %v596_v56, %v598_v15  ;;  %v600_v19 = vpop.permute.xlu1 %599 }
  0xbe   : > { %v612_v20 = vsel %vm241_vm0, %v603_v17, 0  ;;  %v604_v21 = vsel %vm601_vm6, %v598_v15, %v600_v19  ;;  %v313_v17 = vpop.f32.mrf.mxu3 }
  0xbf   : > { %637 = vmatpush.bf16.msra.mxu0 %v612_v20  ;;  %v615_v22 = vsel %vm241_vm0, %v604_v21, 0 }
  0xc0   : > { %1781 = vmatmul.msk.bf16.vlgmr.msrb.gmra.mxu3 %vm237_vm1, %v1780_v18  ;;  %650 = vmatpush.bf16.msra.mxu1 %v615_v22  ;;  %v1797_v22 = vld [vmem:[%s2305_s1 + $0x2] sm:$0x3] }
  0xc1   : > { %1487 = vrot.lane.b32.xlu2 %v1479_v1, %s1878_s27  ;;  %s207_s27 = scalar_lea.vmem %s2308_s4, %s1757_s17 }
  0xc2   : > { %1565 = vrot.lane.b32.xlu0 %v1557_v8, %s1879_s28 }
  0xc3   : > { %v756_v29 = vpop.permute.xlu2 %755 }
  0xc4   : > { %v675_v24 = vpop.permute.xlu0 %674 }
  0xc5   : > { %v677_v25 = vpop.permute.xlu1 %676  ;;  %v681_v9 = vsel %vm680_vm7, %v673_v4, %v675_v24  ;;  %v1033_v4 = vsel %vm241_vm0, %v1974_v52, 0 }
  0xc6   : > { %v682_v26 = vsel %vm680_vm7, %v675_v24, %v677_v25  ;;  %v688_v27 = vsel %vm241_vm0, %v681_v9, 0  ;;  %v683_v28 = vsel %vm680_vm7, %v677_v25, %v679_v16 }
  0xc7   : > { %1777 = vmatmul.msk.bf16.vlgmr.msrb.gmra.mxu0 %vm237_vm1, %v1776_v23  ;;  %1778 = vmatmul.msk.bf16.vlgmr.msrb.gmra.mxu1 %vm237_vm1, %v1776_v23  ;;  %v691_v30 = vsel %vm241_vm0, %v682_v26, 0  ;;  %v694_v31 = vsel %vm241_vm0, %v683_v28, 0 }
  0xc8   : > { %716 = vmatpush.bf16.msra.mxu3 %v691_v30  ;;  %703 = vmatpush.bf16.msra.mxu2 %v688_v27 }
  0xc9   : > { %729 = vmatpush.bf16.msrb.mxu0 %v694_v31  ;;  %1563 = vrot.lane.b32.xlu2 %v1555_v40, %s1879_s28 }
  0xca   : > { %1779 = vmatmul.msk.bf16.vlgmr.msrb.gmra.mxu2 %vm237_vm1, %v1776_v23  ;;  %v315_v23 = vpop.f32.mrf.mxu3 }
  0xcb   : > { %v833_v39 = vpop.permute.xlu2 %832 }
  0xcc   : > { %v752_v32 = vpop.permute.xlu0 %751 }
  0xcd   : > { %v754_v34 = vpop.permute.xlu1 %753 }
  0xce   : > { %v760_v35 = vsel %vm759_vm8, %v752_v32, %v754_v34  ;;  %v761_v36 = vsel %vm759_vm8, %v754_v34, %v756_v29 }
  0xcf   : > { %v767_v37 = vsel %vm241_vm0, %v760_v35, 0  ;;  %v770_v38 = vsel %vm241_vm0, %v761_v36, 0  ;;  %v1807_v35 = vld [vmem:[%s2305_s1 + $0xa] sm:$0x3] }
  0xd0   : > { %1786 = vmatmul.msk.bf16.vlgmr.msra.gmra.mxu3 %vm237_vm1, %v1784_v33  ;;  %782 = vmatpush.bf16.msrb.mxu1 %v767_v37 }
  0xd1   : > { %795 = vmatpush.bf16.msrb.mxu2 %v770_v38 }
  0xd3   : > { %v964_v47 = vpop.permute.xlu2 %963 }
  0xd4   : > { %v758_v41 = vpop.permute.xlu0 %757 }
  0xd5   : > { %v762_v42 = vsel %vm759_vm8, %v756_v29, %v758_v41  ;;  %v831_v43 = vpop.permute.xlu1 %830 }
  0xd6   : > { %v773_v44 = vsel %vm241_vm0, %v762_v42, 0  ;;  %v839_v45 = vsel %vm838_vm9, %v831_v43, %v833_v39 }
  0xd7   : > { %1782 = vmatmul.msk.bf16.vlgmr.msra.gmra.mxu0 %vm237_vm1, %v1780_v18  ;;  %1783 = vmatmul.msk.bf16.vlgmr.msra.gmra.mxu1 %vm237_vm1, %v1780_v18  ;;  %v846_v46 = vsel %vm241_vm0, %v839_v45, 0 }
  0xd8   : > { %808 = vmatpush.bf16.msrb.mxu3 %v773_v44  ;;  %861 = vmatpush.bf16.msra.mxu0 %v846_v46 }
  0xda   : > { %1785 = vmatmul.msk.bf16.vlgmr.msra.gmra.mxu2 %vm237_vm1, %v1784_v33 }
  0xdb   : > { %v970_v55 = vpop.permute.xlu2 %969 }
  0xdc   : > { %v835_v48 = vpop.permute.xlu0 %834 }
  0xdd   : > { %v840_v50 = vsel %vm838_vm9, %v833_v39, %v835_v48  ;;  %v837_v51 = vpop.permute.xlu1 %836 }
  0xde   : > { %v849_v56 = vsel %vm241_vm0, %v840_v50, 0  ;;  %v841_v57 = vsel %vm838_vm9, %v835_v48, %v837_v51 }
  0xdf   : > { %v852_v58 = vsel %vm241_vm0, %v841_v57, 0  ;;  %874 = vmatpush.bf16.msra.mxu1 %v849_v56 }
  0xe0   : > { %1791 = vmatmul.msk.bf16.vlgmr.msrb.gmra.mxu3 %vm237_vm1, %v1788_v49  ;;  %887 = vmatpush.bf16.msra.mxu2 %v852_v58 }
  0xe3   : > { %v1096_v5 = vpop.permute.xlu2 %1095 }
  0xe4   : > { %v966_v59 = vpop.permute.xlu0 %965 }
  0xe5   : > { %v971_v60 = vsel %vm233_vm2, %v964_v47, %v966_v59  ;;  %v968_v61 = vpop.permute.xlu1 %967 }
  0xe6   : > { %v978_v62 = vsel %vm241_vm0, %v971_v60, 0  ;;  %v972_v63 = vsel %vm233_vm2, %v966_v59, %v968_v61  ;;  %v973_v0 = vsel %vm233_vm2, %v968_v61, %v970_v55  ;;  %v1817_v55 = vld [vmem:[%s2305_s1 + $0x12] sm:$0x3] }
  0xe7   : > { %1787 = vmatmul.msk.bf16.vlgmr.msrb.gmra.mxu0 %vm237_vm1, %v1784_v33  ;;  %1789 = vmatmul.msk.bf16.vlgmr.msrb.gmra.mxu1 %vm237_vm1, %v1788_v49  ;;  %v981_v1 = vsel %vm241_vm0, %v972_v63, 0  ;;  %v984_v2 = vsel %vm241_vm0, %v973_v0, 0 }
  0xe8   : > { %993 = vmatpush.bf16.msra.mxu3 %v978_v62  ;;  %1006 = vmatpush.bf16.msrb.mxu0 %v981_v1 }
  0xe9   : > { %1019 = vmatpush.bf16.msrb.mxu1 %v984_v2 }
  0xea   : > { %1790 = vmatmul.msk.bf16.vlgmr.msrb.gmra.mxu2 %vm237_vm1, %v1788_v49 }
  0xeb   : > { %1046 = vmatpush.bf16.msrb.mxu2 %v1033_v4  ;;  %v1172_v13 = vpop.permute.xlu2 %1171 }
  0xec   : > { %1059 = vmatpush.bf16.msrb.mxu3 %v1035_v3  ;;  %v1092_v6 = vpop.permute.xlu0 %1091 }
  0xed   : > { %v1094_v10 = vpop.permute.xlu1 %1093 }
  0xee   : > { %v1099_v53 = vsel %vm364_vm3, %v1092_v6, %v1094_v10  ;;  %v1100_v52 = vsel %vm364_vm3, %v1094_v10, %v1096_v5  ;;  %v1812_v6 = vld [vmem:[%s2305_s1 + $0xe] sm:$0x3] }
  0xef   : > { %v1106_v18 = vsel %vm241_vm0, %v1099_v53, 0  ;;  %v1109_v19 = vsel %vm241_vm0, %v1100_v52, 0 }
  0xf0   : > { %1800 = vmatmul.msk.bf16.vlgmr.msra.gmra.mxu3 %vm237_vm1, %v1799_v7 }
  0xf3   : > { %v1248_v21 = vpop.permute.xlu2 %1247 }
  0xf4   : > { %v1098_v12 = vpop.permute.xlu0 %1097 }
  0xf5   : > { %v1101_v15 = vsel %vm364_vm3, %v1096_v5, %v1098_v12  ;;  %v1170_v16 = vpop.permute.xlu1 %1169 }
  0xf6   : > { %v1112_v20 = vsel %vm241_vm0, %v1101_v15, 0  ;;  %v1177_v24 = vsel %vm443_vm4, %v1170_v16, %v1172_v13 }
  0xf7   : > { %1793 = vmatmul.msk.bf16.vlgmr.msra.gmra.mxu0 %vm237_vm1, %v1792_v11  ;;  %1794 = vmatmul.msk.bf16.vlgmr.msra.gmra.mxu1 %vm237_vm1, %v1792_v11  ;;  %v1184_v27 = vsel %vm241_vm0, %v1177_v24, 0 }
  0xf8   : > { %1072 = vmatpush.bf16.msra.mxu0 %v1037_v14  ;;  %1121 = vmatpush.bf16.msra.mxu1 %v1106_v18 }
  0xf9   : > { %1147 = vmatpush.bf16.msra.mxu3 %v1112_v20 }
  0xfa   : > { %1795 = vmatmul.msk.bf16.vlgmr.msra.gmra.mxu2 %vm237_vm1, %v1792_v11 }
  0xfb   : > { %1134 = vmatpush.bf16.msra.mxu2 %v1109_v19  ;;  %v1254_v30 = vpop.permute.xlu2 %1253 }
  0xfc   : > { %v1174_v54 = vpop.permute.xlu0 %1173 }
  0xfd   : > { %v1176_v8 = vpop.permute.xlu1 %1175  ;;  %v1178_v25 = vsel %vm443_vm4, %v1172_v13, %v1174_v54 }
  0xfe   : > { %v1179_v9 = vsel %vm443_vm4, %v1174_v54, %v1176_v8  ;;  %v1187_v31 = vsel %vm241_vm0, %v1178_v25, 0  ;;  %v1822_v54 = vld [vmem:[%s2305_s1 + $0x16] sm:$0x3] }
  0xff   : > { %v1190_v32 = vsel %vm241_vm0, %v1179_v9, 0 }
 0x100   : > { %1804 = vmatmul.msk.bf16.vlgmr.msrb.gmra.mxu3 %vm237_vm1, %v1797_v22 }
 0x103   : > { %v1330_v37 = vpop.permute.xlu2 %1329 }
 0x104   : > { %v1250_v26 = vpop.permute.xlu0 %1249 }
 0x105   : > { %v1255_v28 = vsel %vm522_vm5, %v1248_v21, %v1250_v26  ;;  %v1252_v29 = vpop.permute.xlu1 %1251 }
 0x106   : > { %v1262_v33 = vsel %vm241_vm0, %v1255_v28, 0  ;;  %v1256_v40 = vsel %vm522_vm5, %v1250_v26, %v1252_v29  ;;  %v1257_v41 = vsel %vm522_vm5, %v1252_v29, %v1254_v30 }
 0x107   : > { %1801 = vmatmul.msk.bf16.vlgmr.msrb.gmra.mxu0 %vm237_vm1, %v1799_v7  ;;  %1802 = vmatmul.msk.bf16.vlgmr.msrb.gmra.mxu1 %vm237_vm1, %v1799_v7  ;;  %v1265_v46 = vsel %vm241_vm0, %v1256_v40, 0  ;;  %v1268_v49 = vsel %vm241_vm0, %v1257_v41, 0 }
 0x108   : > { %1199 = vmatpush.bf16.msrb.mxu0 %v1184_v27  ;;  %1212 = vmatpush.bf16.msrb.mxu1 %v1187_v31 }
 0x109   : > { %1277 = vmatpush.bf16.msrb.mxu3 %v1262_v33 }
 0x10a   : > { %1803 = vmatmul.msk.bf16.vlgmr.msrb.gmra.mxu2 %vm237_vm1, %v1797_v22 }
 0x10b   : > { %1225 = vmatpush.bf16.msrb.mxu2 %v1190_v32  ;;  %v1406_v56 = vpop.permute.xlu2 %1405 }
 0x10c   : > { %v1326_v34 = vpop.permute.xlu0 %1325 }
 0x10d   : > { %v1328_v36 = vpop.permute.xlu1 %1327 }
 0x10e   : > { %v1334_v38 = vsel %vm601_vm6, %v1328_v36, %v1330_v37  ;;  %v1333_v42 = vsel %vm601_vm6, %v1326_v34, %v1328_v36 }
 0x10f   : > { %v1343_v39 = vsel %vm241_vm0, %v1334_v38, 0  ;;  %v1340_v50 = vsel %vm241_vm0, %v1333_v42, 0  ;;  %v1827_v38 = vld [vmem:[%s2305_s1 + $0x1a] sm:$0x3] }
 0x110   : > { %1810 = vmatmul.msk.bf16.vlgmr.msra.gmra.mxu3 %vm237_vm1, %v1807_v35 }
 0x111   : > { %1368 = vmatpush.bf16.msra.mxu3 %v1343_v39 }
 0x113   : > { %v1482_v14 = vpop.permute.xlu2 %1481 }
 0x114   : > { %v260_v43 = vpop.f32.mrf.mxu0  ;;  %v273_v44 = vpop.f32.mrf.mxu1 }
 0x115   : > { %v314_v45 = vadd.f32 %v313_v17, %v260_v43  ;;  %v1332_v47 = vpop.permute.xlu0 %1331  ;;  %v1404_v48 = vpop.permute.xlu1 %1403 }
 0x116   : > { %v1335_v63 = vsel %vm601_vm6, %v1330_v37, %v1332_v47  ;;  %v1411_v2 = vsel %vm680_vm7, %v1404_v48, %v1406_v56 }
 0x117   : > { %1805 = vmatmul.msk.bf16.vlgmr.msra.gmra.mxu0 %vm237_vm1, %v1797_v22  ;;  %1808 = vmatmul.msk.bf16.vlgmr.msra.gmra.mxu1 %vm237_vm1, %v1807_v35  ;;  %v1346_v53 = vsel %vm241_vm0, %v1335_v63, 0  ;;  %v1418_v12 = vsel %vm241_vm0, %v1411_v2, 0 }
 0x118   : > { %1290 = vmatpush.bf16.msra.mxu0 %v1265_v46  ;;  %1303 = vmatpush.bf16.msra.mxu1 %v1268_v49 }
 0x11a   : > { %1809 = vmatmul.msk.bf16.vlgmr.msra.gmra.mxu2 %vm237_vm1, %v1807_v35 }
 0x11b   : > { %1355 = vmatpush.bf16.msra.mxu2 %v1340_v50  ;;  %v1488_v24 = vpop.permute.xlu2 %1487 }
 0x11c   : > { %v262_v57 = vpop.f32.mrf.mxu0  ;;  %v275_v58 = vpop.f32.mrf.mxu1 }
 0x11d   : > { %v286_v51 = vpop.f32.mrf.mxu2  ;;  %v1408_v59 = vpop.permute.xlu0 %1407  ;;  %v1837_v57 = vld [vmem:[%s2305_s1 + $0x22] sm:$0x3] }
 0x11e   : > { %v1410_v60 = vpop.permute.xlu1 %1409  ;;  %v1412_v3 = vsel %vm680_vm7, %v1406_v56, %v1408_v59 }
 0x11f   : > { %v1413_v61 = vsel %vm680_vm7, %v1408_v59, %v1410_v60  ;;  %v1421_v13 = vsel %vm241_vm0, %v1412_v3, 0 }
 0x120   : > { %v1424_v62 = vsel %vm241_vm0, %v1413_v61, 0  ;;  %1818 = vmatmul.msk.bf16.vlgmr.msrb.gmra.mxu3 %vm237_vm1, %v1817_v55  ;;  %v1832_v61 = vld [vmem:[%s2305_s1 + $0x1e] sm:$0x3] }
 0x121   : > { %1459 = vmatpush.bf16.msrb.mxu3 %v1424_v62 }
 0x123   : > { %v402_v1 = vpop.f32.mrf.mxu3  ;;  %v1564_v39 = vpop.permute.xlu2 %1563 }
 0x124   : > { %v326_v4 = vpop.f32.mrf.mxu0  ;;  %v339_v5 = vpop.f32.mrf.mxu1 }
 0x125   : > { %v288_v0 = vpop.f32.mrf.mxu2  ;;  %v327_v7 = vadd.f32 %v326_v4, %v273_v44  ;;  %v2194_v10 = vadd.f32 %v339_v5, %v286_v51  ;;  %v1484_v11 = vpop.permute.xlu0 %1483 }
 0x126   : > { %v1486_v52 = vpop.permute.xlu1 %1485  ;;  %v1489_v25 = vsel %vm759_vm8, %v1482_v14, %v1484_v11 }
 0x127   : > { %v2199_v15 = vadd.f32 %v402_v1, %v327_v7  ;;  %1813 = vmatmul.msk.bf16.vlgmr.msrb.gmra.mxu0 %vm237_vm1, %v1812_v6  ;;  %1814 = vmatmul.msk.bf16.vlgmr.msrb.gmra.mxu1 %vm237_vm1, %v1812_v6  ;;  %v1490_v27 = vsel %vm759_vm8, %v1484_v11, %v1486_v52  ;;  %v1491_v28 = vsel %vm759_vm8, %v1486_v52, %v1488_v24  ;;  %v1496_v31 = vsel %vm241_vm0, %v1489_v25, 0 }
 0x128   : > { %1381 = vmatpush.bf16.msrb.mxu0 %v1346_v53  ;;  %1433 = vmatpush.bf16.msrb.mxu1 %v1418_v12  ;;  %v1499_v32 = vsel %vm241_vm0, %v1490_v27, 0  ;;  %v1502_v33 = vsel %vm241_vm0, %v1491_v28, 0 }
 0x12a   : > { %1815 = vmatmul.msk.bf16.vlgmr.msrb.gmra.mxu2 %vm237_vm1, %v1812_v6 }
 0x12b   : > { %1446 = vmatpush.bf16.msrb.mxu2 %v1421_v13  ;;  %v404_v17 = vpop.f32.mrf.mxu3 }
 0x12c   : > { %v328_v19 = vpop.f32.mrf.mxu0  ;;  %v341_v20 = vpop.f32.mrf.mxu1 }
 0x12d   : > { %v389_v16 = vpop.f32.mrf.mxu2  ;;  %v1560_v21 = vpop.permute.xlu0 %1559 }
 0x12e   : > { %v2204_v18 = vadd.f32 %v389_v16, %v314_v45  ;;  %v1562_v22 = vpop.permute.xlu1 %1561 }
 0x12f   : > { %v1567_v8 = vsel %vm838_vm9, %v1560_v21, %v1562_v22  ;;  %v1568_v41 = vsel %vm838_vm9, %v1562_v22, %v1564_v39 }
 0x130   : > { %v1574_v23 = vsel %vm241_vm0, %v1567_v8, 0  ;;  %1824 = vmatmul.msk.bf16.vlgmr.msra.gmra.mxu3 %vm237_vm1, %v1822_v54  ;;  %v1577_v47 = vsel %vm241_vm0, %v1568_v41, 0 }
 0x131   : > { %1589 = vmatpush.bf16.msra.mxu3 %v1574_v23 }
 0x133   : > { %v2213_v26 = vpop.f32.mrf.mxu3 }
 0x134   : > { %v415_v29 = vpop.f32.mrf.mxu0  ;;  %v468_v30 = vpop.f32.mrf.mxu1 }
 0x135   : > { %v391_v9 = vpop.f32.mrf.mxu2  ;;  %v1566_v40 = vpop.permute.xlu0 %1565  ;;  %v498_v6 = vadd.f32 %v468_v30, %v2204_v18  ;;  %v421_v13 = vadd.f32 %v415_v29, %v2194_v10 }
 0x136   : > { %v1569_v44 = vsel %vm838_vm9, %v1564_v39, %v1566_v40 }
 0x137   : > { %1819 = vmatmul.msk.bf16.vlgmr.msra.gmra.mxu0 %vm237_vm1, %v1817_v55  ;;  %1820 = vmatmul.msk.bf16.vlgmr.msra.gmra.mxu1 %vm237_vm1, %v1817_v55  ;;  %v1580_v48 = vsel %vm241_vm0, %v1569_v44, 0  ;;  %v500_v20 = vadd.f32 %v2213_v26, %v421_v13 }
 0x138   : > { %1511 = vmatpush.bf16.msra.mxu0 %v1496_v31  ;;  %1524 = vmatpush.bf16.msra.mxu1 %v1499_v32 }
 0x13a   : > { %1823 = vmatmul.msk.bf16.vlgmr.msra.gmra.mxu2 %vm237_vm1, %v1822_v54 }
 0x13b   : > { %1537 = vmatpush.bf16.msra.mxu2 %v1502_v33  ;;  %v496_v35 = vpop.f32.mrf.mxu3 }
 0x13c   : > { %v417_v36 = vpop.f32.mrf.mxu0  ;;  %v470_v37 = vpop.f32.mrf.mxu1 }
 0x13d   : > { %v481_v34 = vpop.f32.mrf.mxu2 }
 0x13e   : > { %v499_v7 = vadd.f32 %v481_v34, %v2199_v15 }
 0x140   : > { %1830 = vmatmul.msk.bf16.vlgmr.msrb.gmra.mxu3 %vm237_vm1, %v1827_v38 }
 0x143   : > { %v626_v43 = vpop.f32.mrf.mxu3 }
 0x144   : > { %v547_v45 = vpop.f32.mrf.mxu0  ;;  %v560_v46 = vpop.f32.mrf.mxu1 }
 0x145   : > { %v483_v42 = vpop.f32.mrf.mxu2  ;;  %v577_v53 = vadd.f32 %v547_v45, %v498_v6  ;;  %v578_v52 = vadd.f32 %v560_v46, %v499_v7 }
 0x147   : > { %1825 = vmatmul.msk.bf16.vlgmr.msrb.gmra.mxu0 %vm237_vm1, %v1822_v54  ;;  %1828 = vmatmul.msk.bf16.vlgmr.msrb.gmra.mxu1 %vm237_vm1, %v1827_v38  ;;  %v656_v19 = vadd.f32 %v626_v43, %v577_v53  ;;  %v2253_v54 = vld [vmem:[%s2306_s2] sm:$0x7] }
 0x148   : > { %1602 = vmatpush.bf16.msrb.mxu0 %v1577_v47  ;;  %1615 = vmatpush.bf16.msrb.mxu1 %v1580_v48  ;;  %v916_v24 = vperm.slane %v2253_v54, 0  ;;  %v917_v10 = vperm.slane %v2253_v54, 1 }
 0x14a   : > { %1829 = vmatmul.msk.bf16.vlgmr.msrb.gmra.mxu2 %vm237_vm1, %v1827_v38  ;;  %v918_v38 = vperm.slane %v2253_v54, 2 }
 0x14b   : > { %v628_v50 = vpop.f32.mrf.mxu3 }
 0x14c   : > { %v549_v51 = vpop.f32.mrf.mxu0  ;;  %v562_v56 = vpop.f32.mrf.mxu1 }
 0x14d   : > { %v573_v49 = vpop.f32.mrf.mxu2 }
 0x14e   : > { %v579_v15 = vadd.f32 %v573_v49, %v500_v20 }
 0x150   : > { %1838 = vmatmul.msk.bf16.vlgmr.msra.gmra.mxu3 %vm237_vm1, %v1837_v57 }
 0x153   : > { %v718_v55 = vpop.f32.mrf.mxu3 }
 0x154   : > { %v639_v59 = vpop.f32.mrf.mxu0  ;;  %v652_v60 = vpop.f32.mrf.mxu1 }
 0x155   : > { %v575_v58 = vpop.f32.mrf.mxu2  ;;  %v657_v17 = vadd.f32 %v639_v59, %v578_v52  ;;  %v658_v9 = vadd.f32 %v652_v60, %v579_v15 }
 0x157   : > { %1833 = vmatmul.msk.bf16.vlgmr.msra.gmra.mxu0 %vm237_vm1, %v1832_v61  ;;  %1834 = vmatmul.msk.bf16.vlgmr.msra.gmra.mxu1 %vm237_vm1, %v1832_v61  ;;  %v736_v18 = vadd.f32 %v718_v55, %v657_v17 }
 0x15a   : > { %1835 = vmatmul.msk.bf16.vlgmr.msra.gmra.mxu2 %vm237_vm1, %v1832_v61 }
 0x15b   : > { %v720_v63 = vpop.f32.mrf.mxu3 }
 0x15c   : > { %v641_v0 = vpop.f32.mrf.mxu0  ;;  %v654_v1 = vpop.f32.mrf.mxu1 }
 0x15d   : > { %v705_v62 = vpop.f32.mrf.mxu2 }
 0x15e   : > { %v735_v21 = vadd.f32 %v705_v62, %v656_v19 }
 0x163   : > { %v810_v3 = vpop.f32.mrf.mxu3 }
 0x164   : > { %v731_v4 = vpop.f32.mrf.mxu0  ;;  %v784_v5 = vpop.f32.mrf.mxu1 }
 0x165   : > { %v707_v2 = vpop.f32.mrf.mxu2  ;;  %v814_v22 = vadd.f32 %v784_v5, %v735_v21  ;;  %v737_v30 = vadd.f32 %v731_v4, %v658_v9 }
 0x167   : > { %1839 = vmatmul.msk.bf16.vlgmr.msrb.gmra.mxu0 %vm237_vm1, %v1837_v57  ;;  %1840 = vmatmul.msk.bf16.vlgmr.msrb.gmra.mxu1 %vm237_vm1, %v1837_v57  ;;  %v816_v37 = vadd.f32 %v810_v3, %v737_v30 }
 0x16b   : > { %v812_v12 = vpop.f32.mrf.mxu3 }
 0x16c   : > { %v733_v14 = vpop.f32.mrf.mxu0  ;;  %v786_v16 = vpop.f32.mrf.mxu1 }
 0x16d   : > { %v797_v11 = vpop.f32.mrf.mxu2 }
 0x16e   : > { %v815_v8 = vadd.f32 %v797_v11, %v736_v18 }
 0x173   : > { %v995_v25 = vpop.f32.mrf.mxu3 }
 0x174   : > { %v863_v27 = vpop.f32.mrf.mxu0  ;;  %v876_v28 = vpop.f32.mrf.mxu1 }
 0x175   : > { %v799_v23 = vpop.f32.mrf.mxu2  ;;  %v893_v26 = vadd.f32 %v863_v27, %v814_v22  ;;  %v894_v29 = vadd.f32 %v876_v28, %v815_v8 }
 0x177   : > { %v922_v31 = vmul.f32 %v916_v24, %v893_v26  ;;  %v896_v32 = vpack.c.bf16 %v894_v29, %v893_v26  ;;  %v923_v33 = vmul.f32 %v917_v10, %v894_v29 }
 0x179   : > { %v934_v34 = vmul.f32 %v922_v31, %v922_v31  ;;  %v935_v35 = vmul.f32 %v923_v33, %v923_v33  ;;  %v925_v36 = vsel %vm911_vm10, %v922_v31, 0.0  ;;  %v926_v39 = vsel %vm911_vm10, %v923_v33, 0.0 }
 0x17a   : > { %v927_v42 = vadd.f32 %v926_v39, %v925_v36  ;;  %v900_v49 = vrot.slane %v896_v32, 2 }
 0x17b   : > { %v997_v41 = vpop.f32.mrf.mxu3  ;;  %v937_v43 = vsel %vm911_vm10, %v934_v34, 0.0  ;;  %v938_v44 = vsel %vm911_vm10, %v935_v35, 0.0 }
 0x17c   : > { %v865_v46 = vpop.f32.mrf.mxu0  ;;  %v878_v47 = vpop.f32.mrf.mxu1  ;;  %v939_v48 = vadd.f32 %v938_v44, %v937_v43  ;;  %v906_v60 = vsel %vm903_vm11, %v896_v32, %v900_v49 }
 0x17d   : > { %v889_v40 = vpop.f32.mrf.mxu2 }
 0x17e   : > { %v895_v45 = vadd.f32 %v889_v40, %v816_v37 }
 0x180   : > { %v897_v50 = vpack.c.bf16 %v895_v45, %v895_v45  ;;  %v924_v51 = vmul.f32 %v918_v38, %v895_v45 }
 0x182   : > { %v901_v56 = vrot.slane %v897_v50, 4  ;;  %v902_v57 = vrot.slane %v897_v50, 6  ;;  %v928_v58 = vsel %vm911_vm10, %v924_v51, 0.0  ;;  %v936_v55 = vmul.f32 %v924_v51, %v924_v51 }
 0x183   : > { %v929_v59 = vadd.f32 %v928_v58, %v927_v42  ;;  %v1061_v1 = vpop.f32.mrf.mxu3 }
 0x184   : > { %v910_v61 = vsel %vm907_vm12, %v901_v56, %v902_v57  ;;  %v940_v62 = vsel %vm911_vm10, %v936_v55, 0.0  ;;  %v1008_v3 = vpop.f32.mrf.mxu0  ;;  %v1021_v4 = vpop.f32.mrf.mxu1 }
 0x185   : > { %v912_v63 = vsel %vm911_vm10, %v906_v60, %v910_v61  ;;  %v891_v0 = vpop.f32.mrf.mxu2  ;;  %930 = vadd.xlane.f32.xlu1 %v929_v59  ;;  %v941_v2 = vadd.f32 %v940_v62, %v939_v48  ;;  %v1062_v5 = vadd.f32 %v1061_v1, %v1008_v3 }
 0x186   : > { %914 = vst [vmem:[%s2273_s24] sm:$0x3f] %v912_v63 }
 0x187   : > { %942 = vadd.xlane.f32.xlu0 %v941_v2 }
 0x18b   : > { %v1063_v7 = vpop.f32.mrf.mxu3 }
 0x18c   : > { %v1010_v52 = vpop.f32.mrf.mxu0  ;;  %v1023_v11 = vpop.f32.mrf.mxu1 }
 0x18d   : > { %v1048_v6 = vpop.f32.mrf.mxu2 }
 0x18e   : > { %v1049_v53 = vadd.f32 %v1048_v6, %v995_v25 }
 0x193   : > { %v1149_v13 = vpop.f32.mrf.mxu3 }
 0x194   : > { %v1074_v14 = vpop.f32.mrf.mxu0  ;;  %v1123_v16 = vpop.f32.mrf.mxu1 }
 0x195   : > { %v1050_v12 = vpop.f32.mrf.mxu2  ;;  %v1075_v17 = vadd.f32 %v1074_v14, %v1021_v4  ;;  %v1153_v19 = vadd.f32 %v1123_v16, %v1049_v53 }
 0x197   : > { %v1155_v20 = vadd.f32 %v1149_v13, %v1075_v17 }
 0x19b   : > { %v1151_v21 = vpop.f32.mrf.mxu3 }
 0x19c   : > { %v1076_v15 = vpop.f32.mrf.mxu0  ;;  %v1125_v22 = vpop.f32.mrf.mxu1 }
 0x19d   : > { %v1136_v18 = vpop.f32.mrf.mxu2 }
 0x19e   : > { %v1154_v58 = vadd.f32 %v1136_v18, %v1062_v5 }
 0x1a3   : > { %v1279_v23 = vpop.f32.mrf.mxu3 }
 0x1a4   : > { %v1201_v9 = vpop.f32.mrf.mxu0  ;;  %v1214_v27 = vpop.f32.mrf.mxu1 }
 0x1a5   : > { %v1138_v8 = vpop.f32.mrf.mxu2  ;;  %v1231_v47 = vadd.f32 %v1201_v9, %v1153_v19  ;;  %v1232_v59 = vadd.f32 %v1214_v27, %v1154_v58 }
 0x1a7   : > { %v1309_v50 = vadd.f32 %v1279_v23, %v1231_v47 }
 0x1ab   : > { %v1281_v26 = vpop.f32.mrf.mxu3 }
 0x1ac   : > { %v1203_v25 = vpop.f32.mrf.mxu0  ;;  %v1216_v29 = vpop.f32.mrf.mxu1 }
 0x1ad   : > { %v1227_v28 = vpop.f32.mrf.mxu2 }
 0x1ae   : > { %v1233_v60 = vadd.f32 %v1227_v28, %v1155_v20 }
 0x1b3   : > { %v1370_v31 = vpop.f32.mrf.mxu3 }
 0x1b4   : > { %v1292_v32 = vpop.f32.mrf.mxu0  ;;  %v1305_v33 = vpop.f32.mrf.mxu1 }
 0x1b5   : > { %v1229_v30 = vpop.f32.mrf.mxu2  ;;  %v1310_v62 = vadd.f32 %v1292_v32, %v1232_v59  ;;  %v1311_v63 = vadd.f32 %v1305_v33, %v1233_v60 }
 0x1b7   : > { %v1388_v7 = vadd.f32 %v1370_v31, %v1310_v62 }
 0x1bb   : > { %v1372_v35 = vpop.f32.mrf.mxu3 }
 0x1bc   : > { %v1294_v36 = vpop.f32.mrf.mxu0  ;;  %v1307_v37 = vpop.f32.mrf.mxu1 }
 0x1bd   : > { %v1357_v34 = vpop.f32.mrf.mxu2 }
 0x1be   : > { %v1387_v57 = vadd.f32 %v1357_v34, %v1309_v50 }
 0x1c3   : > { %v1461_v40 = vpop.f32.mrf.mxu3 }
 0x1c4   : > { %v1383_v41 = vpop.f32.mrf.mxu0  ;;  %v1435_v42 = vpop.f32.mrf.mxu1 }
 0x1c5   : > { %v1359_v39 = vpop.f32.mrf.mxu2  ;;  %v1465_v55 = vadd.f32 %v1435_v42, %v1387_v57  ;;  %v1389_v4 = vadd.f32 %v1383_v41, %v1311_v63 }
 0x1c7   : > { %v1467_v53 = vadd.f32 %v1461_v40, %v1389_v4 }
 0x1cb   : > { %v1463_v44 = vpop.f32.mrf.mxu3 }
 0x1cc   : > { %v1385_v45 = vpop.f32.mrf.mxu0  ;;  %v1437_v46 = vpop.f32.mrf.mxu1 }
 0x1cd   : > { %v1448_v43 = vpop.f32.mrf.mxu2 }
 0x1ce   : > { %v1466_v52 = vadd.f32 %v1448_v43, %v1388_v7 }
 0x1d3   : > { %v1591_v49 = vpop.f32.mrf.mxu3 }
 0x1d4   : > { %v1513_v51 = vpop.f32.mrf.mxu0  ;;  %v1526_v56 = vpop.f32.mrf.mxu1 }
 0x1d5   : > { %v1450_v48 = vpop.f32.mrf.mxu2  ;;  %v1543_v61 = vadd.f32 %v1513_v51, %v1465_v55  ;;  %v1544_v12 = vadd.f32 %v1526_v56, %v1466_v52 }
 0x1d7   : > { %v1621_v6 = vadd.f32 %v1591_v49, %v1543_v61 }
 0x1d9   : > { %v1641_v11 = vmul.f32 %v1621_v6, %v916_v24 }
 0x1db   : > { %v1593_v1 = vpop.f32.mrf.mxu3  ;;  %v1653_v20 = vmul.f32 %v1641_v11, %v1641_v11  ;;  %v1644_v27 = vsel %vm911_vm10, %v1641_v11, 0.0 }
 0x1dc   : > { %v1515_v2 = vpop.f32.mrf.mxu0  ;;  %v1528_v3 = vpop.f32.mrf.mxu1 }
 0x1dd   : > { %v1539_v0 = vpop.f32.mrf.mxu2  ;;  %v1656_v25 = vsel %vm911_vm10, %v1653_v20, 0.0 }
 0x1de   : > { %v1545_v5 = vadd.f32 %v1539_v0, %v1467_v53 }
 0x1e4   : > { %v1604_v14 = vpop.f32.mrf.mxu0  ;;  %v1617_v16 = vpop.f32.mrf.mxu1 }
 0x1e5   : > { %v1541_v13 = vpop.f32.mrf.mxu2  ;;  %v1622_v17 = vadd.f32 %v1604_v14, %v1544_v12  ;;  %v1623_v19 = vadd.f32 %v1617_v16, %v1545_v5 }
 0x1e7   : > { %v1624_v18 = vpack.c.bf16 %v1622_v17, %v1621_v6  ;;  %v1642_v21 = vmul.f32 %v1622_v17, %v917_v10  ;;  %v1625_v15 = vpack.c.bf16 %v1623_v19, %v1623_v19  ;;  %v1643_v22 = vmul.f32 %v1623_v19, %v918_v38 }
 0x1e9   : > { %v1628_v8 = vrot.slane %v1624_v18, 2  ;;  %v1654_v23 = vmul.f32 %v1642_v21, %v1642_v21  ;;  %v1629_v24 = vrot.slane %v1625_v15, 4  ;;  %v1630_v9 = vrot.slane %v1625_v15, 6 }
 0x1ea   : > { %v1645_v28 = vsel %vm911_vm10, %v1642_v21, 0.0  ;;  %v1655_v26 = vmul.f32 %v1643_v22, %v1643_v22  ;;  %v1647_v33 = vsel %vm911_vm10, %v1643_v22, 0.0 }
 0x1eb   : > { %v1633_v29 = vsel %vm903_vm11, %v1624_v18, %v1628_v8  ;;  %v1636_v10 = vsel %vm907_vm12, %v1629_v24, %v1630_v9  ;;  %v1646_v30 = vadd.f32 %v1645_v28, %v1644_v27  ;;  %v1657_v54 = vsel %vm911_vm10, %v1654_v23, 0.0 }
 0x1ec   : > { %v1637_v38 = vsel %vm911_vm10, %v1633_v29, %v1636_v10  ;;  %v1606_v31 = vpop.f32.mrf.mxu0  ;;  %v1619_v32 = vpop.f32.mrf.mxu1  ;;  %v1658_v34 = vadd.f32 %v1657_v54, %v1656_v25  ;;  %v1659_v36 = vsel %vm911_vm10, %v1655_v26, 0.0 }
 0x1ed   : > { %1841 = vst [vmem:[%s2273_s24 + $0x6] sm:$0x3f] %v1637_v38  ;;  %v1648_v35 = vadd.f32 %v1647_v33, %v1646_v30 }
 0x1ee   : > { %v1660_v37 = vadd.f32 %v1659_v36, %v1658_v34 }
 0x1ef   : > { %1649 = vadd.xlane.f32.xlu2 %v1648_v35 }
 0x1f7   : > { %1661 = vadd.xlane.f32.xlu2 %v1660_v37 }
 0x1f8   : > { %v931_v39 = vpop.xlane.xlu1 %930 }
 0x1f9   : > { %933 = vst.msk [vmem:[%s207_s27] sm:$0xf] %vm932_vm13, %v931_v39 }
 0x1fa   : > { %v943_v40 = vpop.xlane.xlu0 %942 }
 0x1fb   : > { %945 = vst.msk [vmem:[%s207_s27] sm:$0xf] %vm944_vm14, %v943_v40 }
 0x262   : > { %v1650_v41 = vpop.xlane.xlu2 %1649 }
 0x263   : > { %1842 = vst.msk [vmem:[%s207_s27 + $0x4] sm:$0xf] %vm932_vm13, %v1650_v41 }
 0x26a   : > { %v1662_v42 = vpop.xlane.xlu2 %1661 }
 0x26b   : > { %1843 = vst.msk [vmem:[%s207_s27 + $0x4] sm:$0xf] %vm944_vm14, %v1662_v42 }
 0x26c PF: > { %s15_s15 = sadd.s32 1, %s1870_s15  }
 0x26d   : > { %p12_p4 = scmp.ge.s32.totalorder %s15_s15, 4  }
 0x26f   :  { %14 = sbr.rel (!%p12_p4) target bundleno = 1 (0x1), region = 94 }

</bundles_post_ra>
